<compile_context>
chip_gen: v6e
topology: v6e:2x2x1
jax: 0.10.0
libtpu: 0.0.40
codegen_flags: <defaults>
</compile_context>

<pallas_src>
import jax
import jax.numpy as jnp
from jax import lax
from jax.experimental import pallas as pl
from jax.experimental.pallas import tpu as pltpu

LANES = 128
SUBLANES = 8


def _round_up(n, m):
    return ((n + m - 1) // m) * m


# ----------------------------- fused Pallas kernel ---------------------------

def _make_fused_kernel(n_layers: int, T: int, H: int, mxu_dtype):
    """Kernel: (x, [w_ih,w_hh,b]*L, fc_w, fc_b) -> out (B, F_pad)."""

    def kernel(x_ref, *refs):
        hseq_ref = refs[-1]                    # VMEM scratch (T, B, H)
        out_ref = refs[-2]                     # (B, F_pad)
        fc_b_ref = refs[-3]                    # (1, F_pad)
        fc_w_ref = refs[-4]                    # (H, F_pad)
        layer_refs = refs[:3 * n_layers]

        B = out_ref.shape[0]
        G = 4 * H

        # Gate-column mask for the fused activation pass.  Hoisted out of every
        # loop: JAX does not CSE broadcast_in_dim, so building it per step would
        # emit T*L broadcasts.
        lane = lax.broadcasted_iota(jnp.int32, (B, G), 1)
        is_cell_gate = (lane >= 2 * H) & (lane < 3 * H)   # the g (cell-input) cols

        h = None
        for l in range(n_layers):
            w_ih = layer_refs[3 * l][...].astype(mxu_dtype)      # (D, 4H)
            w_hh = layer_refs[3 * l + 1][...].astype(mxu_dtype)  # (H, 4H)
            b = layer_refs[3 * l + 2][...]                       # (1, 4H) = b_ih+b_hh

            if l == 0:
                xin = x_ref[...].astype(mxu_dtype)               # (T, B, D_in)
            else:
                xin = hseq_ref[...].astype(mxu_dtype)            # (T, B, H)
            D = xin.shape[-1]

            # ---- hoisted input projection: one big MXU matmul per layer ----
            gx = (jnp.dot(xin.reshape(T * B, D), w_ih,
                          preferred_element_type=jnp.float32) + b).reshape(T, B, G)

            h = jnp.zeros((B, H), jnp.float32)
            c = jnp.zeros((B, H), jnp.float32)
            for t in range(T):                 # fully unrolled (T static, small)
                gates = gx[t] + jnp.dot(h.astype(mxu_dtype), w_hh,
                                        preferred_element_type=jnp.float32)
                # One full-width (B, 4H) tanh on the EUP;
                # sigmoid(x) = 0.5*(1 + tanh(x/2)) for the i/f/o columns.
                t_all = jnp.tanh(jnp.where(is_cell_gate, gates, 0.5 * gates))
                act = jnp.where(is_cell_gate, t_all, 0.5 * (t_all + 1.0))
                i_g = act[:, 0 * H:1 * H]
                f_g = act[:, 1 * H:2 * H]
                g_g = act[:, 2 * H:3 * H]
                o_g = act[:, 3 * H:4 * H]
                c = f_g * c + i_g * g_g
                h = o_g * jnp.tanh(c)
                if l + 1 < n_layers:
                    hseq_ref[t] = h            # stays on-chip for the next layer

        # ---- final Linear on the last timestep, fused into the epilogue ----
        # Output is a 128-lane-dense padded slab -> unmasked vst.
        out_ref[...] = (jnp.dot(h.astype(mxu_dtype),
                                fc_w_ref[...].astype(mxu_dtype),
                                preferred_element_type=jnp.float32)
                        + fc_b_ref[...]).astype(out_ref.dtype)

    return kernel


# ----------------------------- wrapper ---------------------------------------

@jax.jit
def simple_lstm_forward(x_btd, params):
    """x_btd: (B, T, D_in) float32 -> (B, n_output_features) float32."""
    mxu_dtype = jnp.bfloat16                    # MXU operands; f32 accumulate
    B, T, _ = x_btd.shape
    H = params["lstm"][0][1].shape[0]
    n_layers = len(params["lstm"])
    d_out = params["fc_w"].shape[1]

    # time-major + pad batch to a multiple of 8 sublanes for full-width vregs
    x = jnp.transpose(x_btd, (1, 0, 2))         # (T, B, D)
    B_pad = _round_up(B, SUBLANES)
    if B_pad != B:
        x = jnp.pad(x, ((0, 0), (0, B_pad - B), (0, 0)))

    # lane-dense output: pad FC width to a multiple of 128, slice back after
    F_pad = _round_up(d_out, LANES)
    fc_w = jnp.pad(params["fc_w"], ((0, 0), (0, F_pad - d_out)))
    fc_b = jnp.pad(params["fc_b"], ((0, 0), (0, F_pad - d_out)))

    flat_w = []
    for (w_ih, w_hh, b) in params["lstm"]:
        flat_w += [w_ih, w_hh, b]

    out = pl.pallas_call(
        _make_fused_kernel(n_layers, T, H, mxu_dtype),
        out_shape=jax.ShapeDtypeStruct((B_pad, F_pad), jnp.float32),
        scratch_shapes=[pltpu.VMEM((T, B_pad, H), jnp.float32)],
        compiler_params=pltpu.CompilerParams(vmem_limit_bytes=64 * 1024 * 1024),
    )(x, *flat_w, fc_w, fc_b)
    return out[:B, :d_out]


# ----------------------------- params / reference ----------------------------

def init_params(key, d_in, hidden, n_layers, d_out):
    """Deterministic init mimicking PyTorch's U(-1/sqrt(H), 1/sqrt(H))."""
    k = 1.0 / float(hidden) ** 0.5
    keys = jax.random.split(key, n_layers * 4 + 2)
    idx = 0
    layers = []
    din = d_in
    for _ in range(n_layers):
        w_ih = jax.random.uniform(keys[idx], (din, 4 * hidden), jnp.float32, -k, k); idx += 1
        w_hh = jax.random.uniform(keys[idx], (hidden, 4 * hidden), jnp.float32, -k, k); idx += 1
        b_ih = jax.random.uniform(keys[idx], (4 * hidden,), jnp.float32, -k, k); idx += 1
        b_hh = jax.random.uniform(keys[idx], (4 * hidden,), jnp.float32, -k, k); idx += 1
        layers.append((w_ih, w_hh, (b_ih + b_hh).reshape(1, 4 * hidden)))
        din = hidden
    fc_w = jax.random.uniform(keys[idx], (hidden, d_out), jnp.float32, -k, k); idx += 1
    fc_b = jax.random.uniform(keys[idx], (1, d_out), jnp.float32, -k, k)
    return {"lstm": layers, "fc_w": fc_w, "fc_b": fc_b}


def reference_forward(x_btd, params):
    """Pure-JAX f32 reference (lax.scan LSTM), gate order [i, f, g, o]."""
    x = jnp.transpose(x_btd, (1, 0, 2))
    for (w_ih, w_hh, b) in params["lstm"]:
        H = w_hh.shape[0]
        B = x.shape[1]

        def step(carry, x_t):
            h, c = carry
            g = x_t @ w_ih + h @ w_hh + b[0]
            i = jax.nn.sigmoid(g[:, :H])
            f = jax.nn.sigmoid(g[:, H:2 * H])
            gg = jnp.tanh(g[:, 2 * H:3 * H])
            o = jax.nn.sigmoid(g[:, 3 * H:4 * H])
            c = f * c + i * gg
            h = o * jnp.tanh(c)
            return (h, c), h

        (_, _), x = lax.scan(step, (jnp.zeros((B, H)), jnp.zeros((B, H))), x)
    return x[-1] @ params["fc_w"] + params["fc_b"][0]


# ----------------------------- main -------------------------------------------

if __name__ == "__main__":
    B, T, D_IN, HIDDEN, N_LAYERS, D_OUT = 2, 8, 16, 32, 2, 4

    key = jax.random.PRNGKey(0)
    kx, kp = jax.random.split(key)
    x = jax.random.normal(kx, (B, T, D_IN), dtype=jnp.float32)
    params = init_params(kp, D_IN, HIDDEN, N_LAYERS, D_OUT)

    out = jax.block_until_ready(simple_lstm_forward(x, params))
    assert out.shape == (B, D_OUT), out.shape

    ref = jax.block_until_ready(reference_forward(x, params))
    # bf16 MXU operands (f32 accumulation) => slightly looser tolerance vs f32 ref.
    assert jnp.allclose(out, ref, atol=5e-2, rtol=5e-2), (out, ref)

    print("KERNEL_OK")
</pallas_src>

<mosaic_0001>
module attributes {stable_mosaic.version = 11 : i64} {
  func.func @kernel(%arg0: memref<8x8x16xf32, #tpu.memory_space<vmem>>, %arg1: memref<16x128xf32, #tpu.memory_space<vmem>>, %arg2: memref<32x128xf32, #tpu.memory_space<vmem>>, %arg3: memref<1x128xf32, #tpu.memory_space<vmem>>, %arg4: memref<32x128xf32, #tpu.memory_space<vmem>>, %arg5: memref<32x128xf32, #tpu.memory_space<vmem>>, %arg6: memref<1x128xf32, #tpu.memory_space<vmem>>, %arg7: memref<32x128xf32, #tpu.memory_space<vmem>>, %arg8: memref<1x128xf32, #tpu.memory_space<vmem>>, %arg9: memref<8x128xf32, #tpu.memory_space<vmem>>, %arg10: memref<8x8x32xf32, #tpu.memory_space<vmem>>) attributes {dimension_semantics = [], scalar_prefetch = 0 : i64, scratch_operands = 1 : i64, tpu.core_type = #tpu.core_type<tc>} {
    %0 = tpu.iota {dimensions = array<i32: 1>} : vector<8x128xi32>
    %c64_i32 = arith.constant 64 : i32
    %1 = vector.broadcast %c64_i32 : i32 to vector<8x128xi32>
    %2 = arith.cmpi sge, %0, %1 : vector<8x128xi32>
    %c96_i32 = arith.constant 96 : i32
    %3 = vector.broadcast %c96_i32 : i32 to vector<8x128xi32>
    %4 = arith.cmpi slt, %0, %3 : vector<8x128xi32>
    %5 = arith.andi %2, %4 : vector<8x128xi1>
    %c0 = arith.constant 0 : index
    %c0_0 = arith.constant 0 : index
    %6 = vector.load %arg1[%c0, %c0_0] : memref<16x128xf32, #tpu.memory_space<vmem>>, vector<16x128xf32>
    %7 = arith.truncf %6 : vector<16x128xf32> to vector<16x128xbf16>
    %c0_1 = arith.constant 0 : index
    %c0_2 = arith.constant 0 : index
    %8 = vector.load %arg2[%c0_1, %c0_2] : memref<32x128xf32, #tpu.memory_space<vmem>>, vector<32x128xf32>
    %9 = arith.truncf %8 : vector<32x128xf32> to vector<32x128xbf16>
    %c0_3 = arith.constant 0 : index
    %c0_4 = arith.constant 0 : index
    %10 = vector.load %arg3[%c0_3, %c0_4] : memref<1x128xf32, #tpu.memory_space<vmem>>, vector<1x128xf32>
    %c0_5 = arith.constant 0 : index
    %c0_6 = arith.constant 0 : index
    %c0_7 = arith.constant 0 : index
    %11 = vector.load %arg0[%c0_5, %c0_6, %c0_7] : memref<8x8x16xf32, #tpu.memory_space<vmem>>, vector<8x8x16xf32>
    %12 = arith.truncf %11 : vector<8x8x16xf32> to vector<8x8x16xbf16>
    %13 = vector.shape_cast %12 : vector<8x8x16xbf16> to vector<64x16xbf16>
    %cst = arith.constant dense<0.000000e+00> : vector<64x128xf32>
    %14 = tpu.matmul %13, %7, %cst {dimension_numbers = #tpu.dot_dimension_numbers<[1], [0], [0], [1], [0, 0, 1, 1], [], []>} : vector<64x16xbf16>, vector<16x128xbf16>, vector<64x128xf32> -> vector<64x128xf32>
    %15 = vector.broadcast %10 : vector<1x128xf32> to vector<64x128xf32>
    %16 = arith.addf %14, %15 : vector<64x128xf32>
    %17 = vector.shape_cast %16 : vector<64x128xf32> to vector<8x8x128xf32>
    %cst_8 = arith.constant 0.000000e+00 : f32
    %18 = vector.broadcast %cst_8 : f32 to vector<8x32xf32>
    %cst_9 = arith.constant 0.000000e+00 : f32
    %19 = vector.broadcast %cst_9 : f32 to vector<8x32xf32>
    %20 = vector.extract_strided_slice %17 {offsets = [0, 0, 0], sizes = [1, 8, 128], strides = [1, 1, 1]} : vector<8x8x128xf32> to vector<1x8x128xf32>
    %21 = vector.shape_cast %20 : vector<1x8x128xf32> to vector<8x128xf32>
    %22 = arith.truncf %18 : vector<8x32xf32> to vector<8x32xbf16>
    %cst_10 = arith.constant dense<0.000000e+00> : vector<8x128xf32>
    %23 = tpu.matmul %22, %9, %cst_10 {dimension_numbers = #tpu.dot_dimension_numbers<[1], [0], [0], [1], [0, 0, 1, 1], [], []>} : vector<8x32xbf16>, vector<32x128xbf16>, vector<8x128xf32> -> vector<8x128xf32>
    %24 = arith.addf %21, %23 : vector<8x128xf32>
    %cst_11 = arith.constant 5.000000e-01 : f32
    %25 = vector.broadcast %cst_11 : f32 to vector<8x128xf32>
    %26 = arith.mulf %25, %24 : vector<8x128xf32>
    %27 = arith.select %5, %24, %26 : vector<8x128xi1>, vector<8x128xf32>
    %28 = math.tanh %27 : vector<8x128xf32>
    %cst_12 = arith.constant 1.000000e+00 : f32
    %29 = vector.broadcast %cst_12 : f32 to vector<8x128xf32>
    %30 = arith.addf %28, %29 : vector<8x128xf32>
    %cst_13 = arith.constant 5.000000e-01 : f32
    %31 = vector.broadcast %cst_13 : f32 to vector<8x128xf32>
    %32 = arith.mulf %31, %30 : vector<8x128xf32>
    %33 = arith.select %5, %28, %32 : vector<8x128xi1>, vector<8x128xf32>
    %34 = vector.extract_strided_slice %33 {offsets = [0, 0], sizes = [8, 32], strides = [1, 1]} : vector<8x128xf32> to vector<8x32xf32>
    %35 = vector.extract_strided_slice %33 {offsets = [0, 32], sizes = [8, 32], strides = [1, 1]} : vector<8x128xf32> to vector<8x32xf32>
    %36 = vector.extract_strided_slice %33 {offsets = [0, 64], sizes = [8, 32], strides = [1, 1]} : vector<8x128xf32> to vector<8x32xf32>
    %37 = vector.extract_strided_slice %33 {offsets = [0, 96], sizes = [8, 32], strides = [1, 1]} : vector<8x128xf32> to vector<8x32xf32>
    %38 = arith.mulf %35, %19 : vector<8x32xf32>
    %39 = arith.mulf %34, %36 : vector<8x32xf32>
    %40 = arith.addf %38, %39 : vector<8x32xf32>
    %41 = math.tanh %40 : vector<8x32xf32>
    %42 = arith.mulf %37, %41 : vector<8x32xf32>
    %c0_14 = arith.constant 0 : index
    %c0_15 = arith.constant 0 : index
    %c0_16 = arith.constant 0 : index
    %43 = vector.load %arg10[%c0_14, %c0_15, %c0_16] : memref<8x8x32xf32, #tpu.memory_space<vmem>>, vector<1x8x32xf32>
    %44 = vector.shape_cast %43 : vector<1x8x32xf32> to vector<8x32xf32>
    %45 = vector.shape_cast %42 : vector<8x32xf32> to vector<1x8x32xf32>
    tpu.vector_store %arg10[%c0_14, %c0_15, %c0_16], %45 {strides = array<i32>} : memref<8x8x32xf32, #tpu.memory_space<vmem>>, vector<1x8x32xf32>,
    %46 = vector.extract_strided_slice %17 {offsets = [1, 0, 0], sizes = [1, 8, 128], strides = [1, 1, 1]} : vector<8x8x128xf32> to vector<1x8x128xf32>
    %47 = vector.shape_cast %46 : vector<1x8x128xf32> to vector<8x128xf32>
    %48 = arith.truncf %42 : vector<8x32xf32> to vector<8x32xbf16>
    %cst_17 = arith.constant dense<0.000000e+00> : vector<8x128xf32>
    %49 = tpu.matmul %48, %9, %cst_17 {dimension_numbers = #tpu.dot_dimension_numbers<[1], [0], [0], [1], [0, 0, 1, 1], [], []>} : vector<8x32xbf16>, vector<32x128xbf16>, vector<8x128xf32> -> vector<8x128xf32>
    %50 = arith.addf %47, %49 : vector<8x128xf32>
    %cst_18 = arith.constant 5.000000e-01 : f32
    %51 = vector.broadcast %cst_18 : f32 to vector<8x128xf32>
    %52 = arith.mulf %51, %50 : vector<8x128xf32>
    %53 = arith.select %5, %50, %52 : vector<8x128xi1>, vector<8x128xf32>
    %54 = math.tanh %53 : vector<8x128xf32>
    %cst_19 = arith.constant 1.000000e+00 : f32
    %55 = vector.broadcast %cst_19 : f32 to vector<8x128xf32>
    %56 = arith.addf %54, %55 : vector<8x128xf32>
    %cst_20 = arith.constant 5.000000e-01 : f32
    %57 = vector.broadcast %cst_20 : f32 to vector<8x128xf32>
    %58 = arith.mulf %57, %56 : vector<8x128xf32>
    %59 = arith.select %5, %54, %58 : vector<8x128xi1>, vector<8x128xf32>
    %60 = vector.extract_strided_slice %59 {offsets = [0, 0], sizes = [8, 32], strides = [1, 1]} : vector<8x128xf32> to vector<8x32xf32>
    %61 = vector.extract_strided_slice %59 {offsets = [0, 32], sizes = [8, 32], strides = [1, 1]} : vector<8x128xf32> to vector<8x32xf32>
    %62 = vector.extract_strided_slice %59 {offsets = [0, 64], sizes = [8, 32], strides = [1, 1]} : vector<8x128xf32> to vector<8x32xf32>
    %63 = vector.extract_strided_slice %59 {offsets = [0, 96], sizes = [8, 32], strides = [1, 1]} : vector<8x128xf32> to vector<8x32xf32>
    %64 = arith.mulf %61, %40 : vector<8x32xf32>
    %65 = arith.mulf %60, %62 : vector<8x32xf32>
    %66 = arith.addf %64, %65 : vector<8x32xf32>
    %67 = math.tanh %66 : vector<8x32xf32>
    %68 = arith.mulf %63, %67 : vector<8x32xf32>
    %c1 = arith.constant 1 : index
    %c0_21 = arith.constant 0 : index
    %c0_22 = arith.constant 0 : index
    %69 = vector.load %arg10[%c1, %c0_21, %c0_22] : memref<8x8x32xf32, #tpu.memory_space<vmem>>, vector<1x8x32xf32>
    %70 = vector.shape_cast %69 : vector<1x8x32xf32> to vector<8x32xf32>
    %71 = vector.shape_cast %68 : vector<8x32xf32> to vector<1x8x32xf32>
    tpu.vector_store %arg10[%c1, %c0_21, %c0_22], %71 {strides = array<i32>} : memref<8x8x32xf32, #tpu.memory_space<vmem>>, vector<1x8x32xf32>,
    %72 = vector.extract_strided_slice %17 {offsets = [2, 0, 0], sizes = [1, 8, 128], strides = [1, 1, 1]} : vector<8x8x128xf32> to vector<1x8x128xf32>
    %73 = vector.shape_cast %72 : vector<1x8x128xf32> to vector<8x128xf32>
    %74 = arith.truncf %68 : vector<8x32xf32> to vector<8x32xbf16>
    %cst_23 = arith.constant dense<0.000000e+00> : vector<8x128xf32>
    %75 = tpu.matmul %74, %9, %cst_23 {dimension_numbers = #tpu.dot_dimension_numbers<[1], [0], [0], [1], [0, 0, 1, 1], [], []>} : vector<8x32xbf16>, vector<32x128xbf16>, vector<8x128xf32> -> vector<8x128xf32>
    %76 = arith.addf %73, %75 : vector<8x128xf32>
    %cst_24 = arith.constant 5.000000e-01 : f32
    %77 = vector.broadcast %cst_24 : f32 to vector<8x128xf32>
    %78 = arith.mulf %77, %76 : vector<8x128xf32>
    %79 = arith.select %5, %76, %78 : vector<8x128xi1>, vector<8x128xf32>
    %80 = math.tanh %79 : vector<8x128xf32>
    %cst_25 = arith.constant 1.000000e+00 : f32
    %81 = vector.broadcast %cst_25 : f32 to vector<8x128xf32>
    %82 = arith.addf %80, %81 : vector<8x128xf32>
    %cst_26 = arith.constant 5.000000e-01 : f32
    %83 = vector.broadcast %cst_26 : f32 to vector<8x128xf32>
    %84 = arith.mulf %83, %82 : vector<8x128xf32>
    %85 = arith.select %5, %80, %84 : vector<8x128xi1>, vector<8x128xf32>
    %86 = vector.extract_strided_slice %85 {offsets = [0, 0], sizes = [8, 32], strides = [1, 1]} : vector<8x128xf32> to vector<8x32xf32>
    %87 = vector.extract_strided_slice %85 {offsets = [0, 32], sizes = [8, 32], strides = [1, 1]} : vector<8x128xf32> to vector<8x32xf32>
    %88 = vector.extract_strided_slice %85 {offsets = [0, 64], sizes = [8, 32], strides = [1, 1]} : vector<8x128xf32> to vector<8x32xf32>
    %89 = vector.extract_strided_slice %85 {offsets = [0, 96], sizes = [8, 32], strides = [1, 1]} : vector<8x128xf32> to vector<8x32xf32>
    %90 = arith.mulf %87, %66 : vector<8x32xf32>
    %91 = arith.mulf %86, %88 : vector<8x32xf32>
    %92 = arith.addf %90, %91 : vector<8x32xf32>
    %93 = math.tanh %92 : vector<8x32xf32>
    %94 = arith.mulf %89, %93 : vector<8x32xf32>
    %c2 = arith.constant 2 : index
    %c0_27 = arith.constant 0 : index
    %c0_28 = arith.constant 0 : index
    %95 = vector.load %arg10[%c2, %c0_27, %c0_28] : memref<8x8x32xf32, #tpu.memory_space<vmem>>, vector<1x8x32xf32>
    %96 = vector.shape_cast %95 : vector<1x8x32xf32> to vector<8x32xf32>
    %97 = vector.shape_cast %94 : vector<8x32xf32> to vector<1x8x32xf32>
    tpu.vector_store %arg10[%c2, %c0_27, %c0_28], %97 {strides = array<i32>} : memref<8x8x32xf32, #tpu.memory_space<vmem>>, vector<1x8x32xf32>,
    %98 = vector.extract_strided_slice %17 {offsets = [3, 0, 0], sizes = [1, 8, 128], strides = [1, 1, 1]} : vector<8x8x128xf32> to vector<1x8x128xf32>
    %99 = vector.shape_cast %98 : vector<1x8x128xf32> to vector<8x128xf32>
    %100 = arith.truncf %94 : vector<8x32xf32> to vector<8x32xbf16>
    %cst_29 = arith.constant dense<0.000000e+00> : vector<8x128xf32>
    %101 = tpu.matmul %100, %9, %cst_29 {dimension_numbers = #tpu.dot_dimension_numbers<[1], [0], [0], [1], [0, 0, 1, 1], [], []>} : vector<8x32xbf16>, vector<32x128xbf16>, vector<8x128xf32> -> vector<8x128xf32>
    %102 = arith.addf %99, %101 : vector<8x128xf32>
    %cst_30 = arith.constant 5.000000e-01 : f32
    %103 = vector.broadcast %cst_30 : f32 to vector<8x128xf32>
    %104 = arith.mulf %103, %102 : vector<8x128xf32>
    %105 = arith.select %5, %102, %104 : vector<8x128xi1>, vector<8x128xf32>
    %106 = math.tanh %105 : vector<8x128xf32>
    %cst_31 = arith.constant 1.000000e+00 : f32
    %107 = vector.broadcast %cst_31 : f32 to vector<8x128xf32>
    %108 = arith.addf %106, %107 : vector<8x128xf32>
    %cst_32 = arith.constant 5.000000e-01 : f32
    %109 = vector.broadcast %cst_32 : f32 to vector<8x128xf32>
    %110 = arith.mulf %109, %108 : vector<8x128xf32>
    %111 = arith.select %5, %106, %110 : vector<8x128xi1>, vector<8x128xf32>
    %112 = vector.extract_strided_slice %111 {offsets = [0, 0], sizes = [8, 32], strides = [1, 1]} : vector<8x128xf32> to vector<8x32xf32>
    %113 = vector.extract_strided_slice %111 {offsets = [0, 32], sizes = [8, 32], strides = [1, 1]} : vector<8x128xf32> to vector<8x32xf32>
    %114 = vector.extract_strided_slice %111 {offsets = [0, 64], sizes = [8, 32], strides = [1, 1]} : vector<8x128xf32> to vector<8x32xf32>
    %115 = vector.extract_strided_slice %111 {offsets = [0, 96], sizes = [8, 32], strides = [1, 1]} : vector<8x128xf32> to vector<8x32xf32>
    %116 = arith.mulf %113, %92 : vector<8x32xf32>
    %117 = arith.mulf %112, %114 : vector<8x32xf32>
    %118 = arith.addf %116, %117 : vector<8x32xf32>
    %119 = math.tanh %118 : vector<8x32xf32>
    %120 = arith.mulf %115, %119 : vector<8x32xf32>
    %c3 = arith.constant 3 : index
    %c0_33 = arith.constant 0 : index
    %c0_34 = arith.constant 0 : index
    %121 = vector.load %arg10[%c3, %c0_33, %c0_34] : memref<8x8x32xf32, #tpu.memory_space<vmem>>, vector<1x8x32xf32>
    %122 = vector.shape_cast %121 : vector<1x8x32xf32> to vector<8x32xf32>
    %123 = vector.shape_cast %120 : vector<8x32xf32> to vector<1x8x32xf32>
    tpu.vector_store %arg10[%c3, %c0_33, %c0_34], %123 {strides = array<i32>} : memref<8x8x32xf32, #tpu.memory_space<vmem>>, vector<1x8x32xf32>,
    %124 = vector.extract_strided_slice %17 {offsets = [4, 0, 0], sizes = [1, 8, 128], strides = [1, 1, 1]} : vector<8x8x128xf32> to vector<1x8x128xf32>
    %125 = vector.shape_cast %124 : vector<1x8x128xf32> to vector<8x128xf32>
    %126 = arith.truncf %120 : vector<8x32xf32> to vector<8x32xbf16>
    %cst_35 = arith.constant dense<0.000000e+00> : vector<8x128xf32>
    %127 = tpu.matmul %126, %9, %cst_35 {dimension_numbers = #tpu.dot_dimension_numbers<[1], [0], [0], [1], [0, 0, 1, 1], [], []>} : vector<8x32xbf16>, vector<32x128xbf16>, vector<8x128xf32> -> vector<8x128xf32>
    %128 = arith.addf %125, %127 : vector<8x128xf32>
    %cst_36 = arith.constant 5.000000e-01 : f32
    %129 = vector.broadcast %cst_36 : f32 to vector<8x128xf32>
    %130 = arith.mulf %129, %128 : vector<8x128xf32>
    %131 = arith.select %5, %128, %130 : vector<8x128xi1>, vector<8x128xf32>
    %132 = math.tanh %131 : vector<8x128xf32>
    %cst_37 = arith.constant 1.000000e+00 : f32
    %133 = vector.broadcast %cst_37 : f32 to vector<8x128xf32>
    %134 = arith.addf %132, %133 : vector<8x128xf32>
    %cst_38 = arith.constant 5.000000e-01 : f32
    %135 = vector.broadcast %cst_38 : f32 to vector<8x128xf32>
    %136 = arith.mulf %135, %134 : vector<8x128xf32>
    %137 = arith.select %5, %132, %136 : vector<8x128xi1>, vector<8x128xf32>
    %138 = vector.extract_strided_slice %137 {offsets = [0, 0], sizes = [8, 32], strides = [1, 1]} : vector<8x128xf32> to vector<8x32xf32>
    %139 = vector.extract_strided_slice %137 {offsets = [0, 32], sizes = [8, 32], strides = [1, 1]} : vector<8x128xf32> to vector<8x32xf32>
    %140 = vector.extract_strided_slice %137 {offsets = [0, 64], sizes = [8, 32], strides = [1, 1]} : vector<8x128xf32> to vector<8x32xf32>
    %141 = vector.extract_strided_slice %137 {offsets = [0, 96], sizes = [8, 32], strides = [1, 1]} : vector<8x128xf32> to vector<8x32xf32>
    %142 = arith.mulf %139, %118 : vector<8x32xf32>
    %143 = arith.mulf %138, %140 : vector<8x32xf32>
    %144 = arith.addf %142, %143 : vector<8x32xf32>
    %145 = math.tanh %144 : vector<8x32xf32>
    %146 = arith.mulf %141, %145 : vector<8x32xf32>
    %c4 = arith.constant 4 : index
    %c0_39 = arith.constant 0 : index
    %c0_40 = arith.constant 0 : index
    %147 = vector.load %arg10[%c4, %c0_39, %c0_40] : memref<8x8x32xf32, #tpu.memory_space<vmem>>, vector<1x8x32xf32>
    %148 = vector.shape_cast %147 : vector<1x8x32xf32> to vector<8x32xf32>
    %149 = vector.shape_cast %146 : vector<8x32xf32> to vector<1x8x32xf32>
    tpu.vector_store %arg10[%c4, %c0_39, %c0_40], %149 {strides = array<i32>} : memref<8x8x32xf32, #tpu.memory_space<vmem>>, vector<1x8x32xf32>,
    %150 = vector.extract_strided_slice %17 {offsets = [5, 0, 0], sizes = [1, 8, 128], strides = [1, 1, 1]} : vector<8x8x128xf32> to vector<1x8x128xf32>
    %151 = vector.shape_cast %150 : vector<1x8x128xf32> to vector<8x128xf32>
    %152 = arith.truncf %146 : vector<8x32xf32> to vector<8x32xbf16>
    %cst_41 = arith.constant dense<0.000000e+00> : vector<8x128xf32>
    %153 = tpu.matmul %152, %9, %cst_41 {dimension_numbers = #tpu.dot_dimension_numbers<[1], [0], [0], [1], [0, 0, 1, 1], [], []>} : vector<8x32xbf16>, vector<32x128xbf16>, vector<8x128xf32> -> vector<8x128xf32>
    %154 = arith.addf %151, %153 : vector<8x128xf32>
    %cst_42 = arith.constant 5.000000e-01 : f32
    %155 = vector.broadcast %cst_42 : f32 to vector<8x128xf32>
    %156 = arith.mulf %155, %154 : vector<8x128xf32>
    %157 = arith.select %5, %154, %156 : vector<8x128xi1>, vector<8x128xf32>
    %158 = math.tanh %157 : vector<8x128xf32>
    %cst_43 = arith.constant 1.000000e+00 : f32
    %159 = vector.broadcast %cst_43 : f32 to vector<8x128xf32>
    %160 = arith.addf %158, %159 : vector<8x128xf32>
    %cst_44 = arith.constant 5.000000e-01 : f32
    %161 = vector.broadcast %cst_44 : f32 to vector<8x128xf32>
    %162 = arith.mulf %161, %160 : vector<8x128xf32>
    %163 = arith.select %5, %158, %162 : vector<8x128xi1>, vector<8x128xf32>
    %164 = vector.extract_strided_slice %163 {offsets = [0, 0], sizes = [8, 32], strides = [1, 1]} : vector<8x128xf32> to vector<8x32xf32>
    %165 = vector.extract_strided_slice %163 {offsets = [0, 32], sizes = [8, 32], strides = [1, 1]} : vector<8x128xf32> to vector<8x32xf32>
    %166 = vector.extract_strided_slice %163 {offsets = [0, 64], sizes = [8, 32], strides = [1, 1]} : vector<8x128xf32> to vector<8x32xf32>
    %167 = vector.extract_strided_slice %163 {offsets = [0, 96], sizes = [8, 32], strides = [1, 1]} : vector<8x128xf32> to vector<8x32xf32>
    %168 = arith.mulf %165, %144 : vector<8x32xf32>
    %169 = arith.mulf %164, %166 : vector<8x32xf32>
    %170 = arith.addf %168, %169 : vector<8x32xf32>
    %171 = math.tanh %170 : vector<8x32xf32>
    %172 = arith.mulf %167, %171 : vector<8x32xf32>
    %c5 = arith.constant 5 : index
    %c0_45 = arith.constant 0 : index
    %c0_46 = arith.constant 0 : index
    %173 = vector.load %arg10[%c5, %c0_45, %c0_46] : memref<8x8x32xf32, #tpu.memory_space<vmem>>, vector<1x8x32xf32>
    %174 = vector.shape_cast %173 : vector<1x8x32xf32> to vector<8x32xf32>
    %175 = vector.shape_cast %172 : vector<8x32xf32> to vector<1x8x32xf32>
    tpu.vector_store %arg10[%c5, %c0_45, %c0_46], %175 {strides = array<i32>} : memref<8x8x32xf32, #tpu.memory_space<vmem>>, vector<1x8x32xf32>,
    %176 = vector.extract_strided_slice %17 {offsets = [6, 0, 0], sizes = [1, 8, 128], strides = [1, 1, 1]} : vector<8x8x128xf32> to vector<1x8x128xf32>
    %177 = vector.shape_cast %176 : vector<1x8x128xf32> to vector<8x128xf32>
    %178 = arith.truncf %172 : vector<8x32xf32> to vector<8x32xbf16>
    %cst_47 = arith.constant dense<0.000000e+00> : vector<8x128xf32>
    %179 = tpu.matmul %178, %9, %cst_47 {dimension_numbers = #tpu.dot_dimension_numbers<[1], [0], [0], [1], [0, 0, 1, 1], [], []>} : vector<8x32xbf16>, vector<32x128xbf16>, vector<8x128xf32> -> vector<8x128xf32>
    %180 = arith.addf %177, %179 : vector<8x128xf32>
    %cst_48 = arith.constant 5.000000e-01 : f32
    %181 = vector.broadcast %cst_48 : f32 to vector<8x128xf32>
    %182 = arith.mulf %181, %180 : vector<8x128xf32>
    %183 = arith.select %5, %180, %182 : vector<8x128xi1>, vector<8x128xf32>
    %184 = math.tanh %183 : vector<8x128xf32>
    %cst_49 = arith.constant 1.000000e+00 : f32
    %185 = vector.broadcast %cst_49 : f32 to vector<8x128xf32>
    %186 = arith.addf %184, %185 : vector<8x128xf32>
    %cst_50 = arith.constant 5.000000e-01 : f32
    %187 = vector.broadcast %cst_50 : f32 to vector<8x128xf32>
    %188 = arith.mulf %187, %186 : vector<8x128xf32>
    %189 = arith.select %5, %184, %188 : vector<8x128xi1>, vector<8x128xf32>
    %190 = vector.extract_strided_slice %189 {offsets = [0, 0], sizes = [8, 32], strides = [1, 1]} : vector<8x128xf32> to vector<8x32xf32>
    %191 = vector.extract_strided_slice %189 {offsets = [0, 32], sizes = [8, 32], strides = [1, 1]} : vector<8x128xf32> to vector<8x32xf32>
    %192 = vector.extract_strided_slice %189 {offsets = [0, 64], sizes = [8, 32], strides = [1, 1]} : vector<8x128xf32> to vector<8x32xf32>
    %193 = vector.extract_strided_slice %189 {offsets = [0, 96], sizes = [8, 32], strides = [1, 1]} : vector<8x128xf32> to vector<8x32xf32>
    %194 = arith.mulf %191, %170 : vector<8x32xf32>
    %195 = arith.mulf %190, %192 : vector<8x32xf32>
    %196 = arith.addf %194, %195 : vector<8x32xf32>
    %197 = math.tanh %196 : vector<8x32xf32>
    %198 = arith.mulf %193, %197 : vector<8x32xf32>
    %c6 = arith.constant 6 : index
    %c0_51 = arith.constant 0 : index
    %c0_52 = arith.constant 0 : index
    %199 = vector.load %arg10[%c6, %c0_51, %c0_52] : memref<8x8x32xf32, #tpu.memory_space<vmem>>, vector<1x8x32xf32>
    %200 = vector.shape_cast %199 : vector<1x8x32xf32> to vector<8x32xf32>
    %201 = vector.shape_cast %198 : vector<8x32xf32> to vector<1x8x32xf32>
    tpu.vector_store %arg10[%c6, %c0_51, %c0_52], %201 {strides = array<i32>} : memref<8x8x32xf32, #tpu.memory_space<vmem>>, vector<1x8x32xf32>,
    %202 = vector.extract_strided_slice %17 {offsets = [7, 0, 0], sizes = [1, 8, 128], strides = [1, 1, 1]} : vector<8x8x128xf32> to vector<1x8x128xf32>
    %203 = vector.shape_cast %202 : vector<1x8x128xf32> to vector<8x128xf32>
    %204 = arith.truncf %198 : vector<8x32xf32> to vector<8x32xbf16>
    %cst_53 = arith.constant dense<0.000000e+00> : vector<8x128xf32>
    %205 = tpu.matmul %204, %9, %cst_53 {dimension_numbers = #tpu.dot_dimension_numbers<[1], [0], [0], [1], [0, 0, 1, 1], [], []>} : vector<8x32xbf16>, vector<32x128xbf16>, vector<8x128xf32> -> vector<8x128xf32>
    %206 = arith.addf %203, %205 : vector<8x128xf32>
    %cst_54 = arith.constant 5.000000e-01 : f32
    %207 = vector.broadcast %cst_54 : f32 to vector<8x128xf32>
    %208 = arith.mulf %207, %206 : vector<8x128xf32>
    %209 = arith.select %5, %206, %208 : vector<8x128xi1>, vector<8x128xf32>
    %210 = math.tanh %209 : vector<8x128xf32>
    %cst_55 = arith.constant 1.000000e+00 : f32
    %211 = vector.broadcast %cst_55 : f32 to vector<8x128xf32>
    %212 = arith.addf %210, %211 : vector<8x128xf32>
    %cst_56 = arith.constant 5.000000e-01 : f32
    %213 = vector.broadcast %cst_56 : f32 to vector<8x128xf32>
    %214 = arith.mulf %213, %212 : vector<8x128xf32>
    %215 = arith.select %5, %210, %214 : vector<8x128xi1>, vector<8x128xf32>
    %216 = vector.extract_strided_slice %215 {offsets = [0, 0], sizes = [8, 32], strides = [1, 1]} : vector<8x128xf32> to vector<8x32xf32>
    %217 = vector.extract_strided_slice %215 {offsets = [0, 32], sizes = [8, 32], strides = [1, 1]} : vector<8x128xf32> to vector<8x32xf32>
    %218 = vector.extract_strided_slice %215 {offsets = [0, 64], sizes = [8, 32], strides = [1, 1]} : vector<8x128xf32> to vector<8x32xf32>
    %219 = vector.extract_strided_slice %215 {offsets = [0, 96], sizes = [8, 32], strides = [1, 1]} : vector<8x128xf32> to vector<8x32xf32>
    %220 = arith.mulf %217, %196 : vector<8x32xf32>
    %221 = arith.mulf %216, %218 : vector<8x32xf32>
    %222 = arith.addf %220, %221 : vector<8x32xf32>
    %223 = math.tanh %222 : vector<8x32xf32>
    %224 = arith.mulf %219, %223 : vector<8x32xf32>
    %c7 = arith.constant 7 : index
    %c0_57 = arith.constant 0 : index
    %c0_58 = arith.constant 0 : index
    %225 = vector.load %arg10[%c7, %c0_57, %c0_58] : memref<8x8x32xf32, #tpu.memory_space<vmem>>, vector<1x8x32xf32>
    %226 = vector.shape_cast %225 : vector<1x8x32xf32> to vector<8x32xf32>
    %227 = vector.shape_cast %224 : vector<8x32xf32> to vector<1x8x32xf32>
    tpu.vector_store %arg10[%c7, %c0_57, %c0_58], %227 {strides = array<i32>} : memref<8x8x32xf32, #tpu.memory_space<vmem>>, vector<1x8x32xf32>,
    %c0_59 = arith.constant 0 : index
    %c0_60 = arith.constant 0 : index
    %228 = vector.load %arg4[%c0_59, %c0_60] : memref<32x128xf32, #tpu.memory_space<vmem>>, vector<32x128xf32>
    %229 = arith.truncf %228 : vector<32x128xf32> to vector<32x128xbf16>
    %c0_61 = arith.constant 0 : index
    %c0_62 = arith.constant 0 : index
    %230 = vector.load %arg5[%c0_61, %c0_62] : memref<32x128xf32, #tpu.memory_space<vmem>>, vector<32x128xf32>
    %231 = arith.truncf %230 : vector<32x128xf32> to vector<32x128xbf16>
    %c0_63 = arith.constant 0 : index
    %c0_64 = arith.constant 0 : index
    %232 = vector.load %arg6[%c0_63, %c0_64] : memref<1x128xf32, #tpu.memory_space<vmem>>, vector<1x128xf32>
    %c0_65 = arith.constant 0 : index
    %c0_66 = arith.constant 0 : index
    %c0_67 = arith.constant 0 : index
    %233 = vector.load %arg10[%c0_65, %c0_66, %c0_67] : memref<8x8x32xf32, #tpu.memory_space<vmem>>, vector<8x8x32xf32>
    %234 = arith.truncf %233 : vector<8x8x32xf32> to vector<8x8x32xbf16>
    %235 = vector.shape_cast %234 : vector<8x8x32xbf16> to vector<64x32xbf16>
    %cst_68 = arith.constant dense<0.000000e+00> : vector<64x128xf32>
    %236 = tpu.matmul %235, %229, %cst_68 {dimension_numbers = #tpu.dot_dimension_numbers<[1], [0], [0], [1], [0, 0, 1, 1], [], []>} : vector<64x32xbf16>, vector<32x128xbf16>, vector<64x128xf32> -> vector<64x128xf32>
    %237 = vector.broadcast %232 : vector<1x128xf32> to vector<64x128xf32>
    %238 = arith.addf %236, %237 : vector<64x128xf32>
    %239 = vector.shape_cast %238 : vector<64x128xf32> to vector<8x8x128xf32>
    %cst_69 = arith.constant 0.000000e+00 : f32
    %240 = vector.broadcast %cst_69 : f32 to vector<8x32xf32>
    %cst_70 = arith.constant 0.000000e+00 : f32
    %241 = vector.broadcast %cst_70 : f32 to vector<8x32xf32>
    %242 = vector.extract_strided_slice %239 {offsets = [0, 0, 0], sizes = [1, 8, 128], strides = [1, 1, 1]} : vector<8x8x128xf32> to vector<1x8x128xf32>
    %243 = vector.shape_cast %242 : vector<1x8x128xf32> to vector<8x128xf32>
    %244 = arith.truncf %240 : vector<8x32xf32> to vector<8x32xbf16>
    %cst_71 = arith.constant dense<0.000000e+00> : vector<8x128xf32>
    %245 = tpu.matmul %244, %231, %cst_71 {dimension_numbers = #tpu.dot_dimension_numbers<[1], [0], [0], [1], [0, 0, 1, 1], [], []>} : vector<8x32xbf16>, vector<32x128xbf16>, vector<8x128xf32> -> vector<8x128xf32>
    %246 = arith.addf %243, %245 : vector<8x128xf32>
    %cst_72 = arith.constant 5.000000e-01 : f32
    %247 = vector.broadcast %cst_72 : f32 to vector<8x128xf32>
    %248 = arith.mulf %247, %246 : vector<8x128xf32>
    %249 = arith.select %5, %246, %248 : vector<8x128xi1>, vector<8x128xf32>
    %250 = math.tanh %249 : vector<8x128xf32>
    %cst_73 = arith.constant 1.000000e+00 : f32
    %251 = vector.broadcast %cst_73 : f32 to vector<8x128xf32>
    %252 = arith.addf %250, %251 : vector<8x128xf32>
    %cst_74 = arith.constant 5.000000e-01 : f32
    %253 = vector.broadcast %cst_74 : f32 to vector<8x128xf32>
    %254 = arith.mulf %253, %252 : vector<8x128xf32>
    %255 = arith.select %5, %250, %254 : vector<8x128xi1>, vector<8x128xf32>
    %256 = vector.extract_strided_slice %255 {offsets = [0, 0], sizes = [8, 32], strides = [1, 1]} : vector<8x128xf32> to vector<8x32xf32>
    %257 = vector.extract_strided_slice %255 {offsets = [0, 32], sizes = [8, 32], strides = [1, 1]} : vector<8x128xf32> to vector<8x32xf32>
    %258 = vector.extract_strided_slice %255 {offsets = [0, 64], sizes = [8, 32], strides = [1, 1]} : vector<8x128xf32> to vector<8x32xf32>
    %259 = vector.extract_strided_slice %255 {offsets = [0, 96], sizes = [8, 32], strides = [1, 1]} : vector<8x128xf32> to vector<8x32xf32>
    %260 = arith.mulf %257, %241 : vector<8x32xf32>
    %261 = arith.mulf %256, %258 : vector<8x32xf32>
    %262 = arith.addf %260, %261 : vector<8x32xf32>
    %263 = math.tanh %262 : vector<8x32xf32>
    %264 = arith.mulf %259, %263 : vector<8x32xf32>
    %265 = vector.extract_strided_slice %239 {offsets = [1, 0, 0], sizes = [1, 8, 128], strides = [1, 1, 1]} : vector<8x8x128xf32> to vector<1x8x128xf32>
    %266 = vector.shape_cast %265 : vector<1x8x128xf32> to vector<8x128xf32>
    %267 = arith.truncf %264 : vector<8x32xf32> to vector<8x32xbf16>
    %cst_75 = arith.constant dense<0.000000e+00> : vector<8x128xf32>
    %268 = tpu.matmul %267, %231, %cst_75 {dimension_numbers = #tpu.dot_dimension_numbers<[1], [0], [0], [1], [0, 0, 1, 1], [], []>} : vector<8x32xbf16>, vector<32x128xbf16>, vector<8x128xf32> -> vector<8x128xf32>
    %269 = arith.addf %266, %268 : vector<8x128xf32>
    %cst_76 = arith.constant 5.000000e-01 : f32
    %270 = vector.broadcast %cst_76 : f32 to vector<8x128xf32>
    %271 = arith.mulf %270, %269 : vector<8x128xf32>
    %272 = arith.select %5, %269, %271 : vector<8x128xi1>, vector<8x128xf32>
    %273 = math.tanh %272 : vector<8x128xf32>
    %cst_77 = arith.constant 1.000000e+00 : f32
    %274 = vector.broadcast %cst_77 : f32 to vector<8x128xf32>
    %275 = arith.addf %273, %274 : vector<8x128xf32>
    %cst_78 = arith.constant 5.000000e-01 : f32
    %276 = vector.broadcast %cst_78 : f32 to vector<8x128xf32>
    %277 = arith.mulf %276, %275 : vector<8x128xf32>
    %278 = arith.select %5, %273, %277 : vector<8x128xi1>, vector<8x128xf32>
    %279 = vector.extract_strided_slice %278 {offsets = [0, 0], sizes = [8, 32], strides = [1, 1]} : vector<8x128xf32> to vector<8x32xf32>
    %280 = vector.extract_strided_slice %278 {offsets = [0, 32], sizes = [8, 32], strides = [1, 1]} : vector<8x128xf32> to vector<8x32xf32>
    %281 = vector.extract_strided_slice %278 {offsets = [0, 64], sizes = [8, 32], strides = [1, 1]} : vector<8x128xf32> to vector<8x32xf32>
    %282 = vector.extract_strided_slice %278 {offsets = [0, 96], sizes = [8, 32], strides = [1, 1]} : vector<8x128xf32> to vector<8x32xf32>
    %283 = arith.mulf %280, %262 : vector<8x32xf32>
    %284 = arith.mulf %279, %281 : vector<8x32xf32>
    %285 = arith.addf %283, %284 : vector<8x32xf32>
    %286 = math.tanh %285 : vector<8x32xf32>
    %287 = arith.mulf %282, %286 : vector<8x32xf32>
    %288 = vector.extract_strided_slice %239 {offsets = [2, 0, 0], sizes = [1, 8, 128], strides = [1, 1, 1]} : vector<8x8x128xf32> to vector<1x8x128xf32>
    %289 = vector.shape_cast %288 : vector<1x8x128xf32> to vector<8x128xf32>
    %290 = arith.truncf %287 : vector<8x32xf32> to vector<8x32xbf16>
    %cst_79 = arith.constant dense<0.000000e+00> : vector<8x128xf32>
    %291 = tpu.matmul %290, %231, %cst_79 {dimension_numbers = #tpu.dot_dimension_numbers<[1], [0], [0], [1], [0, 0, 1, 1], [], []>} : vector<8x32xbf16>, vector<32x128xbf16>, vector<8x128xf32> -> vector<8x128xf32>
    %292 = arith.addf %289, %291 : vector<8x128xf32>
    %cst_80 = arith.constant 5.000000e-01 : f32
    %293 = vector.broadcast %cst_80 : f32 to vector<8x128xf32>
    %294 = arith.mulf %293, %292 : vector<8x128xf32>
    %295 = arith.select %5, %292, %294 : vector<8x128xi1>, vector<8x128xf32>
    %296 = math.tanh %295 : vector<8x128xf32>
    %cst_81 = arith.constant 1.000000e+00 : f32
    %297 = vector.broadcast %cst_81 : f32 to vector<8x128xf32>
    %298 = arith.addf %296, %297 : vector<8x128xf32>
    %cst_82 = arith.constant 5.000000e-01 : f32
    %299 = vector.broadcast %cst_82 : f32 to vector<8x128xf32>
    %300 = arith.mulf %299, %298 : vector<8x128xf32>
    %301 = arith.select %5, %296, %300 : vector<8x128xi1>, vector<8x128xf32>
    %302 = vector.extract_strided_slice %301 {offsets = [0, 0], sizes = [8, 32], strides = [1, 1]} : vector<8x128xf32> to vector<8x32xf32>
    %303 = vector.extract_strided_slice %301 {offsets = [0, 32], sizes = [8, 32], strides = [1, 1]} : vector<8x128xf32> to vector<8x32xf32>
    %304 = vector.extract_strided_slice %301 {offsets = [0, 64], sizes = [8, 32], strides = [1, 1]} : vector<8x128xf32> to vector<8x32xf32>
    %305 = vector.extract_strided_slice %301 {offsets = [0, 96], sizes = [8, 32], strides = [1, 1]} : vector<8x128xf32> to vector<8x32xf32>
    %306 = arith.mulf %303, %285 : vector<8x32xf32>
    %307 = arith.mulf %302, %304 : vector<8x32xf32>
    %308 = arith.addf %306, %307 : vector<8x32xf32>
    %309 = math.tanh %308 : vector<8x32xf32>
    %310 = arith.mulf %305, %309 : vector<8x32xf32>
    %311 = vector.extract_strided_slice %239 {offsets = [3, 0, 0], sizes = [1, 8, 128], strides = [1, 1, 1]} : vector<8x8x128xf32> to vector<1x8x128xf32>
    %312 = vector.shape_cast %311 : vector<1x8x128xf32> to vector<8x128xf32>
    %313 = arith.truncf %310 : vector<8x32xf32> to vector<8x32xbf16>
    %cst_83 = arith.constant dense<0.000000e+00> : vector<8x128xf32>
    %314 = tpu.matmul %313, %231, %cst_83 {dimension_numbers = #tpu.dot_dimension_numbers<[1], [0], [0], [1], [0, 0, 1, 1], [], []>} : vector<8x32xbf16>, vector<32x128xbf16>, vector<8x128xf32> -> vector<8x128xf32>
    %315 = arith.addf %312, %314 : vector<8x128xf32>
    %cst_84 = arith.constant 5.000000e-01 : f32
    %316 = vector.broadcast %cst_84 : f32 to vector<8x128xf32>
    %317 = arith.mulf %316, %315 : vector<8x128xf32>
    %318 = arith.select %5, %315, %317 : vector<8x128xi1>, vector<8x128xf32>
    %319 = math.tanh %318 : vector<8x128xf32>
    %cst_85 = arith.constant 1.000000e+00 : f32
    %320 = vector.broadcast %cst_85 : f32 to vector<8x128xf32>
    %321 = arith.addf %319, %320 : vector<8x128xf32>
    %cst_86 = arith.constant 5.000000e-01 : f32
    %322 = vector.broadcast %cst_86 : f32 to vector<8x128xf32>
    %323 = arith.mulf %322, %321 : vector<8x128xf32>
    %324 = arith.select %5, %319, %323 : vector<8x128xi1>, vector<8x128xf32>
    %325 = vector.extract_strided_slice %324 {offsets = [0, 0], sizes = [8, 32], strides = [1, 1]} : vector<8x128xf32> to vector<8x32xf32>
    %326 = vector.extract_strided_slice %324 {offsets = [0, 32], sizes = [8, 32], strides = [1, 1]} : vector<8x128xf32> to vector<8x32xf32>
    %327 = vector.extract_strided_slice %324 {offsets = [0, 64], sizes = [8, 32], strides = [1, 1]} : vector<8x128xf32> to vector<8x32xf32>
    %328 = vector.extract_strided_slice %324 {offsets = [0, 96], sizes = [8, 32], strides = [1, 1]} : vector<8x128xf32> to vector<8x32xf32>
    %329 = arith.mulf %326, %308 : vector<8x32xf32>
    %330 = arith.mulf %325, %327 : vector<8x32xf32>
    %331 = arith.addf %329, %330 : vector<8x32xf32>
    %332 = math.tanh %331 : vector<8x32xf32>
    %333 = arith.mulf %328, %332 : vector<8x32xf32>
    %334 = vector.extract_strided_slice %239 {offsets = [4, 0, 0], sizes = [1, 8, 128], strides = [1, 1, 1]} : vector<8x8x128xf32> to vector<1x8x128xf32>
    %335 = vector.shape_cast %334 : vector<1x8x128xf32> to vector<8x128xf32>
    %336 = arith.truncf %333 : vector<8x32xf32> to vector<8x32xbf16>
    %cst_87 = arith.constant dense<0.000000e+00> : vector<8x128xf32>
    %337 = tpu.matmul %336, %231, %cst_87 {dimension_numbers = #tpu.dot_dimension_numbers<[1], [0], [0], [1], [0, 0, 1, 1], [], []>} : vector<8x32xbf16>, vector<32x128xbf16>, vector<8x128xf32> -> vector<8x128xf32>
    %338 = arith.addf %335, %337 : vector<8x128xf32>
    %cst_88 = arith.constant 5.000000e-01 : f32
    %339 = vector.broadcast %cst_88 : f32 to vector<8x128xf32>
    %340 = arith.mulf %339, %338 : vector<8x128xf32>
    %341 = arith.select %5, %338, %340 : vector<8x128xi1>, vector<8x128xf32>
    %342 = math.tanh %341 : vector<8x128xf32>
    %cst_89 = arith.constant 1.000000e+00 : f32
    %343 = vector.broadcast %cst_89 : f32 to vector<8x128xf32>
    %344 = arith.addf %342, %343 : vector<8x128xf32>
    %cst_90 = arith.constant 5.000000e-01 : f32
    %345 = vector.broadcast %cst_90 : f32 to vector<8x128xf32>
    %346 = arith.mulf %345, %344 : vector<8x128xf32>
    %347 = arith.select %5, %342, %346 : vector<8x128xi1>, vector<8x128xf32>
    %348 = vector.extract_strided_slice %347 {offsets = [0, 0], sizes = [8, 32], strides = [1, 1]} : vector<8x128xf32> to vector<8x32xf32>
    %349 = vector.extract_strided_slice %347 {offsets = [0, 32], sizes = [8, 32], strides = [1, 1]} : vector<8x128xf32> to vector<8x32xf32>
    %350 = vector.extract_strided_slice %347 {offsets = [0, 64], sizes = [8, 32], strides = [1, 1]} : vector<8x128xf32> to vector<8x32xf32>
    %351 = vector.extract_strided_slice %347 {offsets = [0, 96], sizes = [8, 32], strides = [1, 1]} : vector<8x128xf32> to vector<8x32xf32>
    %352 = arith.mulf %349, %331 : vector<8x32xf32>
    %353 = arith.mulf %348, %350 : vector<8x32xf32>
    %354 = arith.addf %352, %353 : vector<8x32xf32>
    %355 = math.tanh %354 : vector<8x32xf32>
    %356 = arith.mulf %351, %355 : vector<8x32xf32>
    %357 = vector.extract_strided_slice %239 {offsets = [5, 0, 0], sizes = [1, 8, 128], strides = [1, 1, 1]} : vector<8x8x128xf32> to vector<1x8x128xf32>
    %358 = vector.shape_cast %357 : vector<1x8x128xf32> to vector<8x128xf32>
    %359 = arith.truncf %356 : vector<8x32xf32> to vector<8x32xbf16>
    %cst_91 = arith.constant dense<0.000000e+00> : vector<8x128xf32>
    %360 = tpu.matmul %359, %231, %cst_91 {dimension_numbers = #tpu.dot_dimension_numbers<[1], [0], [0], [1], [0, 0, 1, 1], [], []>} : vector<8x32xbf16>, vector<32x128xbf16>, vector<8x128xf32> -> vector<8x128xf32>
    %361 = arith.addf %358, %360 : vector<8x128xf32>
    %cst_92 = arith.constant 5.000000e-01 : f32
    %362 = vector.broadcast %cst_92 : f32 to vector<8x128xf32>
    %363 = arith.mulf %362, %361 : vector<8x128xf32>
    %364 = arith.select %5, %361, %363 : vector<8x128xi1>, vector<8x128xf32>
    %365 = math.tanh %364 : vector<8x128xf32>
    %cst_93 = arith.constant 1.000000e+00 : f32
    %366 = vector.broadcast %cst_93 : f32 to vector<8x128xf32>
    %367 = arith.addf %365, %366 : vector<8x128xf32>
    %cst_94 = arith.constant 5.000000e-01 : f32
    %368 = vector.broadcast %cst_94 : f32 to vector<8x128xf32>
    %369 = arith.mulf %368, %367 : vector<8x128xf32>
    %370 = arith.select %5, %365, %369 : vector<8x128xi1>, vector<8x128xf32>
    %371 = vector.extract_strided_slice %370 {offsets = [0, 0], sizes = [8, 32], strides = [1, 1]} : vector<8x128xf32> to vector<8x32xf32>
    %372 = vector.extract_strided_slice %370 {offsets = [0, 32], sizes = [8, 32], strides = [1, 1]} : vector<8x128xf32> to vector<8x32xf32>
    %373 = vector.extract_strided_slice %370 {offsets = [0, 64], sizes = [8, 32], strides = [1, 1]} : vector<8x128xf32> to vector<8x32xf32>
    %374 = vector.extract_strided_slice %370 {offsets = [0, 96], sizes = [8, 32], strides = [1, 1]} : vector<8x128xf32> to vector<8x32xf32>
    %375 = arith.mulf %372, %354 : vector<8x32xf32>
    %376 = arith.mulf %371, %373 : vector<8x32xf32>
    %377 = arith.addf %375, %376 : vector<8x32xf32>
    %378 = math.tanh %377 : vector<8x32xf32>
    %379 = arith.mulf %374, %378 : vector<8x32xf32>
    %380 = vector.extract_strided_slice %239 {offsets = [6, 0, 0], sizes = [1, 8, 128], strides = [1, 1, 1]} : vector<8x8x128xf32> to vector<1x8x128xf32>
    %381 = vector.shape_cast %380 : vector<1x8x128xf32> to vector<8x128xf32>
    %382 = arith.truncf %379 : vector<8x32xf32> to vector<8x32xbf16>
    %cst_95 = arith.constant dense<0.000000e+00> : vector<8x128xf32>
    %383 = tpu.matmul %382, %231, %cst_95 {dimension_numbers = #tpu.dot_dimension_numbers<[1], [0], [0], [1], [0, 0, 1, 1], [], []>} : vector<8x32xbf16>, vector<32x128xbf16>, vector<8x128xf32> -> vector<8x128xf32>
    %384 = arith.addf %381, %383 : vector<8x128xf32>
    %cst_96 = arith.constant 5.000000e-01 : f32
    %385 = vector.broadcast %cst_96 : f32 to vector<8x128xf32>
    %386 = arith.mulf %385, %384 : vector<8x128xf32>
    %387 = arith.select %5, %384, %386 : vector<8x128xi1>, vector<8x128xf32>
    %388 = math.tanh %387 : vector<8x128xf32>
    %cst_97 = arith.constant 1.000000e+00 : f32
    %389 = vector.broadcast %cst_97 : f32 to vector<8x128xf32>
    %390 = arith.addf %388, %389 : vector<8x128xf32>
    %cst_98 = arith.constant 5.000000e-01 : f32
    %391 = vector.broadcast %cst_98 : f32 to vector<8x128xf32>
    %392 = arith.mulf %391, %390 : vector<8x128xf32>
    %393 = arith.select %5, %388, %392 : vector<8x128xi1>, vector<8x128xf32>
    %394 = vector.extract_strided_slice %393 {offsets = [0, 0], sizes = [8, 32], strides = [1, 1]} : vector<8x128xf32> to vector<8x32xf32>
    %395 = vector.extract_strided_slice %393 {offsets = [0, 32], sizes = [8, 32], strides = [1, 1]} : vector<8x128xf32> to vector<8x32xf32>
    %396 = vector.extract_strided_slice %393 {offsets = [0, 64], sizes = [8, 32], strides = [1, 1]} : vector<8x128xf32> to vector<8x32xf32>
    %397 = vector.extract_strided_slice %393 {offsets = [0, 96], sizes = [8, 32], strides = [1, 1]} : vector<8x128xf32> to vector<8x32xf32>
    %398 = arith.mulf %395, %377 : vector<8x32xf32>
    %399 = arith.mulf %394, %396 : vector<8x32xf32>
    %400 = arith.addf %398, %399 : vector<8x32xf32>
    %401 = math.tanh %400 : vector<8x32xf32>
    %402 = arith.mulf %397, %401 : vector<8x32xf32>
    %403 = vector.extract_strided_slice %239 {offsets = [7, 0, 0], sizes = [1, 8, 128], strides = [1, 1, 1]} : vector<8x8x128xf32> to vector<1x8x128xf32>
    %404 = vector.shape_cast %403 : vector<1x8x128xf32> to vector<8x128xf32>
    %405 = arith.truncf %402 : vector<8x32xf32> to vector<8x32xbf16>
    %cst_99 = arith.constant dense<0.000000e+00> : vector<8x128xf32>
    %406 = tpu.matmul %405, %231, %cst_99 {dimension_numbers = #tpu.dot_dimension_numbers<[1], [0], [0], [1], [0, 0, 1, 1], [], []>} : vector<8x32xbf16>, vector<32x128xbf16>, vector<8x128xf32> -> vector<8x128xf32>
    %407 = arith.addf %404, %406 : vector<8x128xf32>
    %cst_100 = arith.constant 5.000000e-01 : f32
    %408 = vector.broadcast %cst_100 : f32 to vector<8x128xf32>
    %409 = arith.mulf %408, %407 : vector<8x128xf32>
    %410 = arith.select %5, %407, %409 : vector<8x128xi1>, vector<8x128xf32>
    %411 = math.tanh %410 : vector<8x128xf32>
    %cst_101 = arith.constant 1.000000e+00 : f32
    %412 = vector.broadcast %cst_101 : f32 to vector<8x128xf32>
    %413 = arith.addf %411, %412 : vector<8x128xf32>
    %cst_102 = arith.constant 5.000000e-01 : f32
    %414 = vector.broadcast %cst_102 : f32 to vector<8x128xf32>
    %415 = arith.mulf %414, %413 : vector<8x128xf32>
    %416 = arith.select %5, %411, %415 : vector<8x128xi1>, vector<8x128xf32>
    %417 = vector.extract_strided_slice %416 {offsets = [0, 0], sizes = [8, 32], strides = [1, 1]} : vector<8x128xf32> to vector<8x32xf32>
    %418 = vector.extract_strided_slice %416 {offsets = [0, 32], sizes = [8, 32], strides = [1, 1]} : vector<8x128xf32> to vector<8x32xf32>
    %419 = vector.extract_strided_slice %416 {offsets = [0, 64], sizes = [8, 32], strides = [1, 1]} : vector<8x128xf32> to vector<8x32xf32>
    %420 = vector.extract_strided_slice %416 {offsets = [0, 96], sizes = [8, 32], strides = [1, 1]} : vector<8x128xf32> to vector<8x32xf32>
    %421 = arith.mulf %418, %400 : vector<8x32xf32>
    %422 = arith.mulf %417, %419 : vector<8x32xf32>
    %423 = arith.addf %421, %422 : vector<8x32xf32>
    %424 = math.tanh %423 : vector<8x32xf32>
    %425 = arith.mulf %420, %424 : vector<8x32xf32>
    %426 = arith.truncf %425 : vector<8x32xf32> to vector<8x32xbf16>
    %c0_103 = arith.constant 0 : index
    %c0_104 = arith.constant 0 : index
    %427 = vector.load %arg7[%c0_103, %c0_104] : memref<32x128xf32, #tpu.memory_space<vmem>>, vector<32x128xf32>
    %428 = arith.truncf %427 : vector<32x128xf32> to vector<32x128xbf16>
    %cst_105 = arith.constant dense<0.000000e+00> : vector<8x128xf32>
    %429 = tpu.matmul %426, %428, %cst_105 {dimension_numbers = #tpu.dot_dimension_numbers<[1], [0], [0], [1], [0, 0, 1, 1], [], []>} : vector<8x32xbf16>, vector<32x128xbf16>, vector<8x128xf32> -> vector<8x128xf32>
    %c0_106 = arith.constant 0 : index
    %c0_107 = arith.constant 0 : index
    %430 = vector.load %arg8[%c0_106, %c0_107] : memref<1x128xf32, #tpu.memory_space<vmem>>, vector<1x128xf32>
    %431 = vector.broadcast %430 : vector<1x128xf32> to vector<8x128xf32>
    %432 = arith.addf %429, %431 : vector<8x128xf32>
    %c0_108 = arith.constant 0 : index
    %c0_109 = arith.constant 0 : index
    %433 = vector.load %arg9[%c0_108, %c0_109] : memref<8x128xf32, #tpu.memory_space<vmem>>, vector<8x128xf32>
    tpu.vector_store %arg9[%c0_108, %c0_109], %432 {strides = array<i32>} : memref<8x128xf32, #tpu.memory_space<vmem>>, vector<8x128xf32>,
    return
  }
}

</mosaic_0001>

<bundles_post_ra>
// kernel: simple_lstm_forward.1
= control target key start
LH: loop header
LB: loop body
LE: loop exit
PB: predicated region body
PF: predicated region fallthrough
CT: control target
= control target key end

     0   :  { %v1869_v0 = vmov 0.0   ;;  %vm1870_vm0 = vmmov 0   ;;  %vm90_vm1 = vcmask 130048   ;;  %v1871_v16 = vmov 0   ;;  %s1873_s29 = smov 32   ;;  %s2389_s1 = inlined_call_operand.vmem [shape: f32[16,128], index: 1, kind: input, shape index: {}]   ;;  %s2390_s2 = inlined_call_operand.vmem [shape: f32[32,128], index: 2, kind: input, shape index: {}]   ;;  %s2391_s0 = inlined_call_operand.vmem [shape: f32[8,8,16], index: 0, kind: input, shape index: {}]   ;;  %s2392_s3 = inlined_call_operand.vmem [shape: f32[1,128], index: 3, kind: input, shape index: {}]   ;;  %s2393_s4 = inlined_call_operand.vmem [shape: f32[32,128], index: 4, kind: input, shape index: {}]   ;;  %s2394_s5 = inlined_call_operand.vmem [shape: f32[32,128], index: 5, kind: input, shape index: {}]   ;;  %s2395_s6 = inlined_call_operand.vmem [shape: f32[1,128], index: 6, kind: input, shape index: {}]   ;;  %s2396_s7 = inlined_call_operand.vmem [shape: f32[32,128], index: 7, kind: input, shape index: {}]   ;;  %s2397_s8 = inlined_call_operand.vmem [shape: f32[1,128], index: 8, kind: input, shape index: {}]   ;;  %s2398_s9 = inlined_call_operand.vmem [shape: f32[8,128], index: 9, kind: output, shape index: {}]  }
   0x1   :  { %1652 = vmatprep.subr.bf16.mxu1 %v1869_v0  ;;  %v38_v1 = vld [vmem:[%s2389_s1] sm:$0xff]  ;;  %v39_v2 = vld [vmem:[%s2389_s1 + $0x8] sm:$0xff]  ;;  %v43_v3 = vld [vmem:[%s2390_s2 + $0x10] sm:$0xff]  ;;  %1656 = vmatprep.mubr.msk.bf16.mxu1 %vm1870_vm0, %v1869_v0  ;;  %v33_v17 = vlaneseq  ;;  %vm168_vm5 = vcmask 261120  }
   0x2   :  { %v40_v4 = vpack.c.bf16 %v39_v2, %v38_v1  ;;  %v44_v5 = vld [vmem:[%s2390_s2 + $0x18] sm:$0xff]  ;;  %v48_v6 = vld [vmem:[%s2391_s0] sm:$0xff]  ;;  %v49_v7 = vld [vmem:[%s2391_s0 + $0x8] sm:$0xff] }
   0x3   :  { %v1945_v8 = vpack.c.bf16 %v44_v5, %v43_v3  ;;  %v1572_v9 = vpack.c.bf16 %v49_v7, %v48_v6  ;;  %v50_v10 = vld [vmem:[%s2391_s0 + $0x10] sm:$0xff]  ;;  %v51_v11 = vld [vmem:[%s2391_s0 + $0x18] sm:$0xff]  ;;  %v41_v12 = vld [vmem:[%s2390_s2] sm:$0xff]  ;;  %v34_v18 = vand.u32 127, %v33_v17 }
   0x4   :  { %1642 = vmatprep.subr.bf16.mxu0 %v40_v4  ;;  %v1573_v13 = vpack.c.bf16 %v51_v11, %v50_v10  ;;  %v42_v14 = vld [vmem:[%s2390_s2 + $0x8] sm:$0xff]  ;;  %v1984_v20 = vld [vmem:[%s2392_s3] ss:$0 sm:$0xff]  ;;  %s1872_s3 = smov 64   ;;  %v54_v3 = vld [vmem:[%s2391_s0 + $0x30] sm:$0xff] }
   0x5   :  { %1653 = vmatpush3.bf16.msra.mxu1 %v1945_v8  ;;  %1643 = vmatpush3.bf16.msra.mxu0 %v40_v4  ;;  %v1960_v15 = vpack.c.bf16 %v42_v14, %v41_v12  ;;  %vm35_vm2 = vcmp.ge.s32.totalorder %v34_v18, 64  ;;  %vm36_vm3 = vcmp.lt.s32.totalorder %v34_v18, 96  ;;  %v52_v1 = vld [vmem:[%s2391_s0 + $0x20] sm:$0xff]  ;;  %v53_v2 = vld [vmem:[%s2391_s0 + $0x28] sm:$0xff]  ;;  %v55_v5 = vld [vmem:[%s2391_s0 + $0x38] sm:$0xff] }
   0x6   :  { %1644 = vmatprep.mubr.msk.bf16.mxu0 %vm90_vm1, %v1572_v9  ;;  %1654 = vmatprep.subr.bf16.mxu1 %v1869_v0  ;;  %vm1987_vm4 = vmand %vm35_vm2, %vm36_vm3  ;;  %v1574_v4 = vpack.c.bf16 %v53_v2, %v52_v1  ;;  %v1575_v6 = vpack.c.bf16 %v55_v5, %v54_v3  ;;  %v1474_v25 = vld [vmem:[%s2396_s7] sm:$0xff] }
   0x7   :  { %1668 = vmatprep.subr.bf16.mxu0 %v1869_v0 }
   0x8   :  { %1645 = vmatmul.mubr.msk.bf16.vlgmr.msra.gmra.mxu0 %vm90_vm1, %v1573_v13 }
   0x9   :  { %1655 = vmatpush3.bf16.msra.mxu1 %v1960_v15  ;;  %1669 = vmatpush3.bf16.msra.mxu0 %v1945_v8 }
   0xa   :  { %1660 = vmatprep.subr.bf16.mxu1 %v1869_v0  ;;  %1670 = vmatprep.subr.bf16.mxu0 %v1869_v0 }
   0xb   :  { %1648 = vmatprep.mubr.msk.bf16.mxu0 %vm90_vm1, %v1574_v4 }
   0xc   :  { %1657 = vmatmul.mubr.bf16.vlgmr.msra.gmra.mxu1 %v1871_v16 }
   0xd   :  { %1661 = vmatpush3.bf16.msra.mxu1 %v1945_v8  ;;  %1664 = vmatprep.mubr.msk.bf16.mxu1 %vm1870_vm0, %v1869_v0 }
   0xe   :  { %1662 = vmatprep.subr.bf16.mxu1 %v1869_v0  ;;  %1671 = vmatpush3.bf16.msra.mxu0 %v1960_v15 }
   0xf   :  { %1684 = vmatprep.subr.bf16.mxu0 %v1869_v0 }
  0x10   :  { %1649 = vmatmul.mubr.msk.bf16.gmra.mxu0 %vm90_vm1, %v1575_v6 }
  0x11   :  { %1663 = vmatpush3.bf16.msra.mxu1 %v1960_v15  ;;  %1672 = vmatprep.mubr.msk.bf16.mxu0 %vm1870_vm0, %v1869_v0 }
  0x12   :  { %1676 = vmatprep.subr.bf16.mxu1 %v1869_v0 }
  0xc8   :  { %v1979_v19 = vpop.f32.mrf.mxu0 }
  0xca   :  { %v137_v21 = vpop.f32.mrf.mxu0 }
  0xcb   :  { %v138_v22 = vadd.f32 %v1984_v20, %v137_v21  ;;  %v146_v21 = vadd.f32 %v1979_v19, %v1984_v20 }
  0xcc   :  { %v206_v23 = vpop.f32.mrf.mxu1  ;;  %v2010_v45 = vpop.f32.mrf.mxu0 }
  0xcd   :  { %v212_v24 = vadd.f32 %v206_v23, %v138_v22 }
  0xce   :  { %v1658_v26 = vpop.f32.mrf.mxu1  ;;  %v140_v46 = vpop.f32.mrf.mxu0 }
  0xcf   :  { %v213_v27 = vmul.f32 0.5, %v212_v24  ;;  %v141_v47 = vadd.f32 %v1984_v20, %v140_v46 }
  0xd0   :  { %v209_v28 = vpop.f32.mrf.mxu1  ;;  %v2048_v13 = vpop.f32.mrf.mxu0 }
  0xd1   :  { %v214_v29 = vsel %vm1987_vm4, %v212_v24, %v213_v27 }
  0xd2   :  { %1805 = vtanh.f32 %v214_v29  ;;  %v1659_v30 = vpop.f32.mrf.mxu1  ;;  %v2050_v14 = vpop.f32.mrf.mxu0 }
  0xd3   :  { %v154_v3 = vadd.f32 %v1984_v20, %v2050_v14 }
  0xd4   :  { %v2052_v17 = vpop.f32.mrf.mxu0 }
  0xd6   :  { %v2054_v18 = vpop.f32.mrf.mxu0 }
  0xdf   :  { %v1806_v31 = vpop.eup %1805 }
  0xe0   :  { %v216_v32 = vadd.f32 1.0, %v1806_v31 }
  0xe2   :  { %v217_v33 = vmul.f32 0.5, %v216_v32 }
  0xe4   :  { %v218_v34 = vsel %vm1987_vm4, %v1806_v31, %v217_v33 }
  0xe5   :  { %221 = vrot.lane.b32.xlu0 %v218_v34, %s1872_s3  ;;  %v219_v37 = vmul.f32 0.0, %v218_v34 }
 0x157   :  { %v222_v35 = vpop.permute.xlu0 %221 }
 0x158   :  { %v224_v36 = vmul.f32 %v222_v35, %v218_v34 }
 0x15a   :  { %226 = vrot.lane.b32.xlu0 %v224_v36, %s1873_s29 }
 0x1cc   :  { %v227_v38 = vpop.permute.xlu0 %226 }
 0x1cd   :  { %v229_v39 = vadd.f32 %v227_v38, %v219_v37 }
 0x1cf   :  { %1807 = vtanh.f32 %v229_v39 }
 0x1dc   :  { %v1808_v40 = vpop.eup %1807 }
 0x1dd   :  { %232 = vrot.lane.b32.xlu1 %v1808_v40, %s1872_s3 }
 0x24f   :  { %v233_v41 = vpop.permute.xlu1 %232 }
 0x250   :  { %v1998_v42 = vmul.f32 %v233_v41, %v218_v34 }
 0x252   :  { %v241_v43 = vpack.c.bf16 %v1998_v42, %v1998_v42 }
 0x254   :  { %243 = vrot.lane.b32.xlu1 %v241_v43, %s1873_s29 }
 0x2c6   :  { %v244_v44 = vpop.permute.xlu1 %243 }
 0x2c7   :  { %1665 = vmatmul.mubr.msk.bf16.vlgmr.msra.gmra.mxu1 %vm168_vm5, %v244_v44  ;;  %v149_v44 = vadd.f32 %v2010_v45, %v1984_v20 }
 0x2c8   :  { %1677 = vmatpush3.bf16.msra.mxu1 %v1945_v8  ;;  %1680 = vmatprep.mubr.msk.bf16.mxu1 %vm1870_vm0, %v1869_v0 }
 0x2c9   :  { %1678 = vmatprep.subr.bf16.mxu1 %v1869_v0 }
 0x2cc   :  { %1679 = vmatpush3.bf16.msra.mxu1 %v1960_v15 }
 0x2cd   :  { %1692 = vmatprep.subr.bf16.mxu1 %v1869_v0 }
 0x387   :  { %v282_v48 = vpop.f32.mrf.mxu1 }
 0x388   :  { %v288_v49 = vadd.f32 %v282_v48, %v141_v47 }
 0x389   :  { %v1666_v50 = vpop.f32.mrf.mxu1 }
 0x38a   :  { %v289_v51 = vmul.f32 0.5, %v288_v49 }
 0x38b   :  { %v285_v52 = vpop.f32.mrf.mxu1 }
 0x38c   :  { %v290_v53 = vsel %vm1987_vm4, %v288_v49, %v289_v51 }
 0x38d   :  { %1809 = vtanh.f32 %v290_v53  ;;  %v1667_v54 = vpop.f32.mrf.mxu1 }
 0x39a   :  { %v1810_v55 = vpop.eup %1809 }
 0x39b   :  { %v292_v56 = vadd.f32 1.0, %v1810_v55 }
 0x39d   :  { %v293_v57 = vmul.f32 0.5, %v292_v56 }
 0x39f   :  { %v294_v58 = vsel %vm1987_vm4, %v1810_v55, %v293_v57 }
 0x3a0   :  { %297 = vrot.lane.b32.xlu0 %v294_v58, %s1872_s3  ;;  %v295_v61 = vmul.f32 %v294_v58, %v229_v39 }
 0x412   :  { %v298_v59 = vpop.permute.xlu0 %297 }
 0x413   :  { %v300_v60 = vmul.f32 %v298_v59, %v294_v58 }
 0x415   :  { %302 = vrot.lane.b32.xlu1 %v300_v60, %s1873_s29 }
 0x487   :  { %v303_v62 = vpop.permute.xlu1 %302 }
 0x488   :  { %v305_v63 = vadd.f32 %v303_v62, %v295_v61 }
 0x48a   :  { %1811 = vtanh.f32 %v305_v63 }
 0x497   :  { %v1812_v7 = vpop.eup %1811 }
 0x498   :  { %308 = vrot.lane.b32.xlu0 %v1812_v7, %s1872_s3 }
 0x50a   :  { %v309_v9 = vpop.permute.xlu0 %308 }
 0x50b   :  { %v2036_v10 = vmul.f32 %v309_v9, %v294_v58 }
 0x50d   :  { %v318_v11 = vpack.c.bf16 %v2036_v10, %v2036_v10 }
 0x50f   :  { %320 = vrot.lane.b32.xlu1 %v318_v11, %s1873_s29 }
 0x581   :  { %v321_v12 = vpop.permute.xlu1 %320 }
 0x582   :  { %1673 = vmatmul.mubr.msk.bf16.vlgmr.msra.gmra.mxu0 %vm168_vm5, %v321_v12 }
 0x583   :  { %1685 = vmatpush3.bf16.msra.mxu0 %v1945_v8  ;;  %1688 = vmatprep.mubr.msk.bf16.mxu0 %vm1870_vm0, %v1869_v0 }
 0x584   :  { %1686 = vmatprep.subr.bf16.mxu0 %v1869_v0 }
 0x587   :  { %1687 = vmatpush3.bf16.msra.mxu0 %v1960_v15 }
 0x588   :  { %1700 = vmatprep.subr.bf16.mxu0 %v1869_v0 }
 0x642   :  { %v359_v22 = vpop.f32.mrf.mxu0 }
 0x643   :  { %v365_v23 = vadd.f32 %v359_v22, %v146_v21 }
 0x644   :  { %v1674_v24 = vpop.f32.mrf.mxu0 }
 0x645   :  { %v366_v26 = vmul.f32 0.5, %v365_v23 }
 0x646   :  { %v362_v27 = vpop.f32.mrf.mxu0 }
 0x647   :  { %v367_v28 = vsel %vm1987_vm4, %v365_v23, %v366_v26 }
 0x648   :  { %1813 = vtanh.f32 %v367_v28  ;;  %v1675_v29 = vpop.f32.mrf.mxu0 }
 0x655   :  { %v1814_v30 = vpop.eup %1813 }
 0x656   :  { %v369_v31 = vadd.f32 1.0, %v1814_v30 }
 0x658   :  { %v370_v32 = vmul.f32 0.5, %v369_v31 }
 0x65a   :  { %v371_v33 = vsel %vm1987_vm4, %v1814_v30, %v370_v32 }
 0x65b   :  { %374 = vrot.lane.b32.xlu0 %v371_v33, %s1872_s3  ;;  %v372_v35 = vmul.f32 %v371_v33, %v305_v63 }
 0x6cd   :  { %v375_v34 = vpop.permute.xlu0 %374 }
 0x6ce   :  { %v377_v19 = vmul.f32 %v375_v34, %v371_v33 }
 0x6d0   :  { %379 = vrot.lane.b32.xlu1 %v377_v19, %s1873_s29  ;;  %v157_v19 = vadd.f32 %v1984_v20, %v2054_v18 }
 0x742   :  { %v380_v36 = vpop.permute.xlu1 %379 }
 0x743   :  { %v382_v37 = vadd.f32 %v380_v36, %v372_v35 }
 0x745   :  { %1815 = vtanh.f32 %v382_v37 }
 0x752   :  { %v1816_v38 = vpop.eup %1815 }
 0x753   :  { %385 = vrot.lane.b32.xlu0 %v1816_v38, %s1872_s3 }
 0x7c5   :  { %v386_v39 = vpop.permute.xlu0 %385 }
 0x7c6   :  { %v2065_v40 = vmul.f32 %v386_v39, %v371_v33 }
 0x7c8   :  { %v395_v41 = vpack.c.bf16 %v2065_v40, %v2065_v40 }
 0x7ca   :  { %397 = vrot.lane.b32.xlu1 %v395_v41, %s1873_s29 }
 0x83c   :  { %v398_v43 = vpop.permute.xlu1 %397 }
 0x83d   :  { %1681 = vmatmul.mubr.msk.bf16.vlgmr.msra.gmra.mxu1 %vm168_vm5, %v398_v43 }
 0x83e   :  { %1693 = vmatpush3.bf16.msra.mxu1 %v1945_v8  ;;  %1696 = vmatprep.mubr.msk.bf16.mxu1 %vm1870_vm0, %v1869_v0 }
 0x83f   :  { %1694 = vmatprep.subr.bf16.mxu1 %v1869_v0 }
 0x842   :  { %1695 = vmatpush3.bf16.msra.mxu1 %v1960_v15 }
 0x843   :  { %1708 = vmatprep.subr.bf16.mxu1 %v1869_v0 }
 0x8fd   :  { %v436_v46 = vpop.f32.mrf.mxu1 }
 0x8fe   :  { %v442_v47 = vadd.f32 %v436_v46, %v149_v44 }
 0x8ff   :  { %v1682_v48 = vpop.f32.mrf.mxu1 }
 0x900   :  { %v443_v49 = vmul.f32 0.5, %v442_v47 }
 0x901   :  { %v439_v50 = vpop.f32.mrf.mxu1 }
 0x902   :  { %v444_v51 = vsel %vm1987_vm4, %v442_v47, %v443_v49 }
 0x903   :  { %1817 = vtanh.f32 %v444_v51  ;;  %v1683_v52 = vpop.f32.mrf.mxu1 }
 0x910   :  { %v1818_v53 = vpop.eup %1817 }
 0x911   :  { %v446_v54 = vadd.f32 1.0, %v1818_v53 }
 0x913   :  { %v447_v55 = vmul.f32 0.5, %v446_v54 }
 0x915   :  { %v448_v56 = vsel %vm1987_vm4, %v1818_v53, %v447_v55 }
 0x916   :  { %451 = vrot.lane.b32.xlu0 %v448_v56, %s1872_s3  ;;  %v449_v58 = vmul.f32 %v448_v56, %v382_v37 }
 0x988   :  { %v452_v57 = vpop.permute.xlu0 %451 }
 0x989   :  { %v454_v45 = vmul.f32 %v452_v57, %v448_v56 }
 0x98b   :  { %456 = vrot.lane.b32.xlu1 %v454_v45, %s1873_s29 }
 0x9fd   :  { %v457_v59 = vpop.permute.xlu1 %456 }
 0x9fe   :  { %v459_v60 = vadd.f32 %v457_v59, %v449_v58 }
 0xa00   :  { %1819 = vtanh.f32 %v459_v60 }
 0xa0d   :  { %v1820_v61 = vpop.eup %1819 }
 0xa0e   :  { %462 = vrot.lane.b32.xlu0 %v1820_v61, %s1872_s3 }
 0xa80   :  { %v463_v62 = vpop.permute.xlu0 %462 }
 0xa81   :  { %v2086_v63 = vmul.f32 %v463_v62, %v448_v56  ;;  %v162_v56 = vadd.f32 %v2048_v13, %v1984_v20 }
 0xa83   :  { %v472_v1 = vpack.c.bf16 %v2086_v63, %v2086_v63 }
 0xa85   :  { %474 = vrot.lane.b32.xlu1 %v472_v1, %s1873_s29 }
 0xaf7   :  { %v475_v2 = vpop.permute.xlu1 %474 }
 0xaf8   :  { %1689 = vmatmul.mubr.msk.bf16.vlgmr.msra.gmra.mxu0 %vm168_vm5, %v475_v2 }
 0xaf9   :  { %1701 = vmatpush3.bf16.msra.mxu0 %v1945_v8  ;;  %1704 = vmatprep.mubr.msk.bf16.mxu0 %vm1870_vm0, %v1869_v0 }
 0xafa   :  { %1702 = vmatprep.subr.bf16.mxu0 %v1869_v0 }
 0xafd   :  { %1703 = vmatpush3.bf16.msra.mxu0 %v1960_v15 }
 0xbb8   :  { %v513_v4 = vpop.f32.mrf.mxu0 }
 0xbb9   :  { %v519_v5 = vadd.f32 %v513_v4, %v154_v3 }
 0xbba   :  { %v1690_v6 = vpop.f32.mrf.mxu0 }
 0xbbb   :  { %v520_v7 = vmul.f32 0.5, %v519_v5 }
 0xbbc   :  { %v516_v9 = vpop.f32.mrf.mxu0 }
 0xbbd   :  { %v521_v11 = vsel %vm1987_vm4, %v519_v5, %v520_v7 }
 0xbbe   :  { %1821 = vtanh.f32 %v521_v11  ;;  %v1691_v12 = vpop.f32.mrf.mxu0 }
 0xbcb   :  { %v1822_v21 = vpop.eup %1821 }
 0xbcc   :  { %v523_v22 = vadd.f32 1.0, %v1822_v21 }
 0xbce   :  { %v524_v23 = vmul.f32 0.5, %v523_v22 }
 0xbd0   :  { %v525_v24 = vsel %vm1987_vm4, %v1822_v21, %v524_v23  ;;  %v782_v21 = vld [vmem:[%s2393_s4 + $0x10] sm:$0xff]  ;;  %v781_v23 = vld [vmem:[%s2393_s4 + $0x8] sm:$0xff] }
 0xbd1   :  { %528 = vrot.lane.b32.xlu0 %v525_v24, %s1872_s3  ;;  %v526_v27 = vmul.f32 %v525_v24, %v459_v60 }
 0xc43   :  { %v529_v26 = vpop.permute.xlu0 %528 }
 0xc44   :  { %v531_v14 = vmul.f32 %v529_v26, %v525_v24 }
 0xc46   :  { %533 = vrot.lane.b32.xlu1 %v531_v14, %s1873_s29 }
 0xcb8   :  { %v534_v28 = vpop.permute.xlu1 %533 }
 0xcb9   :  { %v536_v29 = vadd.f32 %v534_v28, %v526_v27 }
 0xcbb   :  { %1823 = vtanh.f32 %v536_v29 }
 0xcc8   :  { %v1824_v30 = vpop.eup %1823 }
 0xcc9   :  { %539 = vrot.lane.b32.xlu0 %v1824_v30, %s1872_s3 }
 0xd3b   :  { %v540_v31 = vpop.permute.xlu0 %539 }
 0xd3c   :  { %v2106_v32 = vmul.f32 %v540_v31, %v525_v24 }
 0xd3e   :  { %v549_v33 = vpack.c.bf16 %v2106_v32, %v2106_v32 }
 0xd40   :  { %551 = vrot.lane.b32.xlu1 %v549_v33, %s1873_s29 }
 0xdb2   :  { %v552_v34 = vpop.permute.xlu1 %551 }
 0xdb3   :  { %1697 = vmatmul.mubr.msk.bf16.vlgmr.msra.gmra.mxu1 %vm168_vm5, %v552_v34  ;;  %v789_v34 = vld [vmem:[%s2394_s5 + $0x18] sm:$0xff] }
 0xdb4   :  { %1709 = vmatpush3.bf16.msra.mxu1 %v1945_v8  ;;  %1712 = vmatprep.mubr.msk.bf16.mxu1 %vm1870_vm0, %v1869_v0 }
 0xdb5   :  { %1710 = vmatprep.subr.bf16.mxu1 %v1869_v0 }
 0xdb8   :  { %1711 = vmatpush3.bf16.msra.mxu1 %v1960_v15 }
 0xdb9   :  { %1728 = vmatprep.subr.bf16.mxu1 %v1869_v0 }
 0xe73   :  { %v590_v35 = vpop.f32.mrf.mxu1 }
 0xe74   :  { %v596_v36 = vadd.f32 %v590_v35, %v157_v19 }
 0xe75   :  { %v1698_v37 = vpop.f32.mrf.mxu1 }
 0xe76   :  { %v597_v38 = vmul.f32 0.5, %v596_v36 }
 0xe77   :  { %v593_v39 = vpop.f32.mrf.mxu1 }
 0xe78   :  { %v598_v8 = vsel %vm1987_vm4, %v596_v36, %v597_v38  ;;  %v786_v38 = vld [vmem:[%s2394_s5] sm:$0xff]  ;;  %v787_v39 = vld [vmem:[%s2394_s5 + $0x8] sm:$0xff] }
 0xe79   :  { %1825 = vtanh.f32 %v598_v8  ;;  %v1699_v41 = vpop.f32.mrf.mxu1  ;;  %v2193_v8 = vpack.c.bf16 %v787_v39, %v786_v38 }
 0xe86   :  { %v1826_v43 = vpop.eup %1825 }
 0xe87   :  { %v600_v44 = vadd.f32 1.0, %v1826_v43 }
 0xe89   :  { %v601_v46 = vmul.f32 0.5, %v600_v44 }
 0xe8b   :  { %v602_v15 = vsel %vm1987_vm4, %v1826_v43, %v601_v46  ;;  %v165_v43 = vadd.f32 %v2052_v17, %v1984_v20 }
 0xe8c   :  { %605 = vrot.lane.b32.xlu0 %v602_v15, %s1872_s3  ;;  %v603_v48 = vmul.f32 %v602_v15, %v536_v29 }
 0xefe   :  { %v606_v47 = vpop.permute.xlu0 %605 }
 0xeff   :  { %v608_v18 = vmul.f32 %v606_v47, %v602_v15 }
 0xf01   :  { %610 = vrot.lane.b32.xlu1 %v608_v18, %s1873_s29 }
 0xf73   :  { %v611_v49 = vpop.permute.xlu1 %610 }
 0xf74   :  { %v613_v50 = vadd.f32 %v611_v49, %v603_v48  ;;  %v2218_v48 = vld [vmem:[%s2395_s6] ss:$0 sm:$0xff] }
 0xf76   :  { %1827 = vtanh.f32 %v613_v50 }
 0xf83   :  { %v1828_v51 = vpop.eup %1827 }
 0xf84   :  { %616 = vrot.lane.b32.xlu0 %v1828_v51, %s1872_s3 }
 0xff6   :  { %v617_v52 = vpop.permute.xlu0 %616 }
 0xff7   :  { %v2127_v53 = vmul.f32 %v617_v52, %v602_v15 }
 0xff9   :  { %v626_v54 = vpack.c.bf16 %v2127_v53, %v2127_v53 }
 0xffb   :  { %628 = vrot.lane.b32.xlu1 %v626_v54, %s1873_s29 }
0x106d   :  { %v629_v55 = vpop.permute.xlu1 %628 }
0x106e   :  { %1705 = vmatmul.mubr.msk.bf16.vlgmr.msra.gmra.mxu0 %vm168_vm5, %v629_v55 }
0x112e   :  { %v667_v57 = vpop.f32.mrf.mxu0 }
0x112f   :  { %v673_v45 = vadd.f32 %v667_v57, %v162_v56 }
0x1130   :  { %v1706_v58 = vpop.f32.mrf.mxu0 }
0x1131   :  { %v674_v59 = vmul.f32 0.5, %v673_v45 }
0x1132   :  { %v670_v60 = vpop.f32.mrf.mxu0 }
0x1133   :  { %v675_v61 = vsel %vm1987_vm4, %v673_v45, %v674_v59 }
0x1134   :  { %1829 = vtanh.f32 %v675_v61  ;;  %v1707_v62 = vpop.f32.mrf.mxu0 }
0x1141   :  { %v1830_v1 = vpop.eup %1829 }
0x1142   :  { %v677_v2 = vadd.f32 1.0, %v1830_v1 }
0x1144   :  { %v678_v3 = vmul.f32 0.5, %v677_v2 }
0x1146   :  { %v679_v4 = vsel %vm1987_vm4, %v1830_v1, %v678_v3 }
0x1147   :  { %682 = vrot.lane.b32.xlu0 %v679_v4, %s1872_s3  ;;  %v680_v6 = vmul.f32 %v679_v4, %v613_v50 }
0x11b9   :  { %v683_v5 = vpop.permute.xlu0 %682 }
0x11ba   :  { %v685_v13 = vmul.f32 %v683_v5, %v679_v4 }
0x11bc   :  { %687 = vrot.lane.b32.xlu1 %v685_v13, %s1873_s29 }
0x11c0   :  { %237 = vrot.lane.b32.xlu1 %v1998_v42, %s1873_s29  ;;  %v783_v42 = vld [vmem:[%s2393_s4 + $0x18] sm:$0xff] }
0x11c1   :  { %v785_v22 = vpack.c.bf16 %v783_v42, %v782_v21 }
0x11c3   :  { %1716 = vmatprep.subr.bf16.mxu0 %v785_v22 }
0x11c4   :  { %390 = vrot.lane.b32.xlu1 %v2065_v40, %s1873_s29  ;;  %v780_v40 = vld [vmem:[%s2393_s4] sm:$0xff]  ;;  %1717 = vmatpush3.bf16.msra.mxu0 %v785_v22 }
0x11c5   :  { %v784_v24 = vpack.c.bf16 %v781_v23, %v780_v40 }
0x11c7   :  { %1718 = vmatprep.subr.bf16.mxu0 %v784_v24 }
0x11c8   :  { %1719 = vmatpush3.bf16.msra.mxu0 %v784_v24 }
0x11c9   :  { %1744 = vmatprep.subr.bf16.mxu0 %v1869_v0 }
0x122e   :  { %v688_v7 = vpop.permute.xlu1 %687 }
0x122f   :  { %v2145_v9 = vadd.f32 %v688_v7, %v680_v6 }
0x1231   :  { %1831 = vtanh.f32 %v2145_v9 }
0x1232   :  { %v238_v11 = vpop.permute.xlu1 %237 }
0x1233   :  { %240 = vst.msk [vmem:[#allocation2] sm:$0xff] %vm168_vm5, %v238_v11 }
0x1236   :  { %v391_v12 = vpop.permute.xlu1 %390 }
0x1237   :  { %394 = vst.msk [vmem:[#allocation2 + $0x10] sm:$0xff] %vm168_vm5, %v391_v12 }
0x123e   :  { %v1832_v26 = vpop.eup %1831  ;;  %v795_v19 = vld [vmem:[#allocation2 + $0x10] sm:$0xff] }
0x123f   :  { %693 = vrot.lane.b32.xlu0 %v1832_v26, %s1872_s3 }
0x1243   :  { %313 = vrot.lane.b32.xlu0 %v2036_v10, %s1873_s29  ;;  %v793_v10 = vld [vmem:[#allocation2] sm:$0xff] }
0x1247   :  { %467 = vrot.lane.b32.xlu0 %v2086_v63, %s1873_s29  ;;  %v788_v63 = vld [vmem:[%s2394_s5 + $0x10] sm:$0xff] }
0x1248   :  { %v2182_v37 = vpack.c.bf16 %v789_v34, %v788_v63 }
0x12b1   :  { %v694_v14 = vpop.permute.xlu0 %693 }
0x12b2   :  { %v2168_v27 = vmul.f32 %v694_v14, %v679_v4 }
0x12b4   :  { %v703_v28 = vpack.c.bf16 %v2168_v27, %v2168_v27 }
0x12b5   :  { %v314_v29 = vpop.permute.xlu0 %313 }
0x12b6   :  { %317 = vst.msk [vmem:[#allocation2 + $0x8] sm:$0xff] %vm168_vm5, %v314_v29  ;;  %705 = vrot.lane.b32.xlu1 %v703_v28, %s1873_s29 }
0x12b9   :  { %v468_v30 = vpop.permute.xlu0 %467 }
0x12ba   :  { %471 = vst.msk [vmem:[#allocation2 + $0x18] sm:$0xff] %vm168_vm5, %v468_v30 }
0x12bd   :  { %v794_v31 = vld [vmem:[#allocation2 + $0x8] sm:$0xff] }
0x12be   :  { %v1576_v33 = vpack.c.bf16 %v794_v31, %v793_v10 }
0x12c0   :  { %1720 = vmatprep.mubr.msk.bf16.mxu0 %vm168_vm5, %v1576_v33 }
0x12c1   :  { %v796_v35 = vld [vmem:[#allocation2 + $0x18] sm:$0xff] }
0x12c2   :  { %v1577_v36 = vpack.c.bf16 %v796_v35, %v795_v19 }
0x12c4   :  { %1721 = vmatmul.mubr.msk.bf16.vlgmr.msra.gmra.mxu0 %vm168_vm5, %v1577_v36 }
0x12c5   :  { %1745 = vmatpush3.bf16.msra.mxu0 %v2182_v37 }
0x12c6   :  { %1746 = vmatprep.subr.bf16.mxu0 %v1869_v0 }
0x12c9   :  { %1747 = vmatpush3.bf16.msra.mxu0 %v2193_v8 }
0x12ca   :  { %1760 = vmatprep.subr.bf16.mxu0 %v1869_v0 }
0x1328   :  { %v706_v41 = vpop.permute.xlu1 %705 }
0x1329   :  { %1713 = vmatmul.mubr.msk.bf16.vlgmr.msra.gmra.mxu1 %vm168_vm5, %v706_v41 }
0x132a   :  { %1729 = vmatpush3.bf16.msra.mxu1 %v2182_v37  ;;  %1732 = vmatprep.mubr.msk.bf16.mxu1 %vm1870_vm0, %v1869_v0 }
0x132b   :  { %1730 = vmatprep.subr.bf16.mxu1 %v1869_v0 }
0x132e   :  { %1731 = vmatpush3.bf16.msra.mxu1 %v2193_v8 }
0x132f   :  { %1736 = vmatprep.subr.bf16.mxu1 %v1869_v0 }
0x1331   :  { %1733 = vmatmul.mubr.bf16.vlgmr.msra.gmra.mxu1 %v1871_v16 }
0x1332   :  { %1737 = vmatpush3.bf16.msra.mxu1 %v2182_v37  ;;  %1740 = vmatprep.mubr.msk.bf16.mxu1 %vm1870_vm0, %v1869_v0 }
0x1333   :  { %1738 = vmatprep.subr.bf16.mxu1 %v1869_v0 }
0x1336   :  { %1739 = vmatpush3.bf16.msra.mxu1 %v2193_v8 }
0x1337   :  { %1752 = vmatprep.subr.bf16.mxu1 %v1869_v0 }
0x1384   :  { %v2213_v44 = vpop.f32.mrf.mxu0 }
0x1386   :  { %v881_v16 = vpop.f32.mrf.mxu0 }
0x1387   :  { %v882_v50 = vadd.f32 %v2218_v48, %v881_v16 }
0x1388   :  { %v2250_v10 = vpop.f32.mrf.mxu0 }
0x138a   :  { %v884_v31 = vpop.f32.mrf.mxu0 }
0x138b   :  { %v885_v33 = vadd.f32 %v2218_v48, %v884_v31  ;;  %v893_v31 = vadd.f32 %v2250_v10, %v2218_v48 }
0x13e9   :  { %v744_v46 = vpop.f32.mrf.mxu1 }
0x13ea   :  { %v750_v15 = vadd.f32 %v744_v46, %v165_v43 }
0x13eb   :  { %v1714_v47 = vpop.f32.mrf.mxu1 }
0x13ec   :  { %v751_v62 = vmul.f32 0.5, %v750_v15 }
0x13ed   :  { %v747_v18 = vpop.f32.mrf.mxu1 }
0x13ee   :  { %v752_v1 = vsel %vm1987_vm4, %v750_v15, %v751_v62 }
0x13ef   :  { %v1715_v49 = vpop.f32.mrf.mxu1 }
0x13f1   :  { %v946_v51 = vpop.f32.mrf.mxu1 }
0x13f2   :  { %v952_v52 = vadd.f32 %v946_v51, %v882_v50 }
0x13f3   :  { %v1734_v54 = vpop.f32.mrf.mxu1 }
0x13f4   :  { %v953_v55 = vmul.f32 0.5, %v952_v52 }
0x13f5   :  { %v949_v20 = vpop.f32.mrf.mxu1 }
0x13f6   :  { %v954_v17 = vsel %vm1987_vm4, %v952_v52, %v953_v55 }
0x13f7   :  { %1833 = vtanh.f32 %v954_v17  ;;  %v1735_v56 = vpop.f32.mrf.mxu1 }
0x13f8   :  { %1835 = vtanh.f32 %v752_v1 }
0x1404   :  { %v1834_v57 = vpop.eup %1833 }
0x1405   :  { %v956_v45 = vadd.f32 1.0, %v1834_v57  ;;  %v1836_v5 = vpop.eup %1835 }
0x1406   :  { %v754_v13 = vadd.f32 1.0, %v1836_v5 }
0x1407   :  { %v957_v58 = vmul.f32 0.5, %v956_v45 }
0x1408   :  { %v755_v7 = vmul.f32 0.5, %v754_v13 }
0x1409   :  { %v958_v59 = vsel %vm1987_vm4, %v1834_v57, %v957_v58 }
0x140a   :  { %961 = vrot.lane.b32.xlu0 %v958_v59, %s1872_s3  ;;  %v959_v2 = vmul.f32 0.0, %v958_v59  ;;  %v756_v11 = vsel %vm1987_vm4, %v1836_v5, %v755_v7 }
0x140b   :  { %v757_v24 = vmul.f32 %v756_v11, %v2145_v9 }
0x147c   :  { %v962_v60 = vpop.permute.xlu0 %961 }
0x147d   :  { %v964_v61 = vmul.f32 %v962_v60, %v958_v59 }
0x147f   :  { %966 = vrot.lane.b32.xlu1 %v964_v61, %s1873_s29 }
0x14f1   :  { %v967_v3 = vpop.permute.xlu1 %966 }
0x14f2   :  { %v969_v4 = vadd.f32 %v967_v3, %v959_v2  ;;  %v890_v2 = vadd.f32 %v2213_v44, %v2218_v48 }
0x14f4   :  { %1837 = vtanh.f32 %v969_v4 }
0x1501   :  { %v1838_v6 = vpop.eup %1837 }
0x1502   :  { %972 = vrot.lane.b32.xlu0 %v1838_v6, %s1872_s3 }
0x1506   :  { %759 = vrot.lane.b32.xlu0 %v756_v11, %s1872_s3 }
0x1574   :  { %v973_v12 = vpop.permute.xlu0 %972 }
0x1575   :  { %v975_v21 = vmul.f32 %v973_v12, %v958_v59 }
0x1577   :  { %v976_v42 = vpack.c.bf16 %v975_v21, %v975_v21 }
0x1578   :  { %v760_v40 = vpop.permute.xlu0 %759 }
0x1579   :  { %v762_v22 = vmul.f32 %v760_v40, %v756_v11  ;;  %978 = vrot.lane.b32.xlu1 %v976_v42, %s1873_s29 }
0x157b   :  { %764 = vrot.lane.b32.xlu0 %v762_v22, %s1873_s29 }
0x15eb   :  { %v979_v23 = vpop.permute.xlu1 %978 }
0x15ec   :  { %1741 = vmatmul.mubr.msk.bf16.vlgmr.msra.gmra.mxu1 %vm168_vm5, %v979_v23 }
0x15ed   :  { %v765_v26 = vpop.permute.xlu0 %764  ;;  %1753 = vmatpush3.bf16.msra.mxu1 %v2182_v37  ;;  %1756 = vmatprep.mubr.msk.bf16.mxu1 %vm1870_vm0, %v1869_v0 }
0x15ee   :  { %v767_v14 = vadd.f32 %v765_v26, %v757_v24  ;;  %1754 = vmatprep.subr.bf16.mxu1 %v1869_v0 }
0x15f0   :  { %1839 = vtanh.f32 %v767_v14 }
0x15f1   :  { %1755 = vmatpush3.bf16.msra.mxu1 %v2193_v8 }
0x15f2   :  { %1768 = vmatprep.subr.bf16.mxu1 %v1869_v0 }
0x15fd   :  { %v1840_v28 = vpop.eup %1839 }
0x15fe   :  { %770 = vrot.lane.b32.xlu0 %v1840_v28, %s1872_s3 }
0x1602   :  { %544 = vrot.lane.b32.xlu0 %v2106_v32, %s1873_s29 }
0x1606   :  { %698 = vrot.lane.b32.xlu0 %v2168_v27, %s1873_s29 }
0x1670   :  { %v771_v9 = vpop.permute.xlu0 %770 }
0x1671   :  { %v773_v50 = vmul.f32 %v771_v9, %v756_v11 }
0x1674   :  { %v545_v29 = vpop.permute.xlu0 %544 }
0x1675   :  { %548 = vst.msk [vmem:[#allocation2 + $0x20] sm:$0xff] %vm168_vm5, %v545_v29 }
0x1678   :  { %v699_v30 = vpop.permute.xlu0 %698 }
0x1679   :  { %702 = vst.msk [vmem:[#allocation2 + $0x30] sm:$0xff] %vm168_vm5, %v699_v30 }
0x167c   :  { %v797_v17 = vld [vmem:[#allocation2 + $0x20] sm:$0xff] }
0x16ac   :  { %v1017_v63 = vpop.f32.mrf.mxu1 }
0x16ad   :  { %v1023_v34 = vadd.f32 %v1017_v63, %v885_v33 }
0x16ae   :  { %v1742_v19 = vpop.f32.mrf.mxu1 }
0x16af   :  { %v1024_v35 = vmul.f32 0.5, %v1023_v34 }
0x16b0   :  { %v1020_v32 = vpop.f32.mrf.mxu1 }
0x16b1   :  { %v1025_v27 = vsel %vm1987_vm4, %v1023_v34, %v1024_v35 }
0x16b2   :  { %1841 = vtanh.f32 %v1025_v27  ;;  %v1743_v36 = vpop.f32.mrf.mxu1 }
0x16bf   :  { %v1842_v38 = vpop.eup %1841 }
0x16c0   :  { %v1027_v39 = vadd.f32 1.0, %v1842_v38 }
0x16c2   :  { %v1028_v41 = vmul.f32 0.5, %v1027_v39 }
0x16c4   :  { %v1029_v43 = vsel %vm1987_vm4, %v1842_v38, %v1028_v41 }
0x16c5   :  { %1032 = vrot.lane.b32.xlu1 %v1029_v43, %s1872_s3  ;;  %v1030_v47 = vmul.f32 %v1029_v43, %v969_v4 }
0x1737   :  { %v1033_v46 = vpop.permute.xlu1 %1032 }
0x1738   :  { %v1035_v15 = vmul.f32 %v1033_v46, %v1029_v43 }
0x173a   :  { %1037 = vrot.lane.b32.xlu1 %v1035_v15, %s1873_s29 }
0x17ac   :  { %v1038_v16 = vpop.permute.xlu1 %1037 }
0x17ad   :  { %v1040_v18 = vadd.f32 %v1038_v16, %v1030_v47 }
0x17af   :  { %1843 = vtanh.f32 %v1040_v18 }
0x17bc   :  { %v1844_v49 = vpop.eup %1843 }
0x17bd   :  { %1043 = vrot.lane.b32.xlu1 %v1844_v49, %s1872_s3 }
0x17c1   :  { %621 = vrot.lane.b32.xlu1 %v2127_v53, %s1873_s29  ;;  %v799_v53 = vld [vmem:[#allocation2 + $0x30] sm:$0xff] }
0x17c5   :  { %775 = vrot.lane.b32.xlu1 %v773_v50, %s1873_s29 }
0x182f   :  { %v1044_v51 = vpop.permute.xlu1 %1043 }
0x1830   :  { %v1046_v52 = vmul.f32 %v1044_v51, %v1029_v43 }
0x1832   :  { %v1047_v54 = vpack.c.bf16 %v1046_v52, %v1046_v52 }
0x1833   :  { %v622_v55 = vpop.permute.xlu1 %621 }
0x1834   :  { %625 = vst.msk [vmem:[#allocation2 + $0x28] sm:$0xff] %vm168_vm5, %v622_v55  ;;  %1049 = vrot.lane.b32.xlu0 %v1047_v54, %s1873_s29 }
0x1837   :  { %v776_v20 = vpop.permute.xlu1 %775 }
0x1838   :  { %779 = vst.msk [vmem:[#allocation2 + $0x38] sm:$0xff] %vm168_vm5, %v776_v20 }
0x183b   :  { %v798_v56 = vld [vmem:[#allocation2 + $0x28] sm:$0xff] }
0x183c   :  { %v1578_v57 = vpack.c.bf16 %v798_v56, %v797_v17 }
0x183e   :  { %1724 = vmatprep.mubr.msk.bf16.mxu0 %vm168_vm5, %v1578_v57 }
0x183f   :  { %v800_v45 = vld [vmem:[#allocation2 + $0x38] sm:$0xff] }
0x1840   :  { %v1579_v58 = vpack.c.bf16 %v800_v45, %v799_v53 }
0x1842   :  { %1725 = vmatmul.mubr.msk.bf16.gmra.mxu0 %vm168_vm5, %v1579_v58 }
0x1843   :  { %1748 = vmatprep.mubr.msk.bf16.mxu0 %vm1870_vm0, %v1869_v0 }
0x18a6   :  { %v1050_v59 = vpop.permute.xlu0 %1049 }
0x18a7   :  { %1749 = vmatmul.mubr.msk.bf16.vlgmr.msra.gmra.mxu0 %vm168_vm5, %v1050_v59 }
0x18a8   :  { %1761 = vmatpush3.bf16.msra.mxu0 %v2182_v37  ;;  %1764 = vmatprep.mubr.msk.bf16.mxu0 %vm1870_vm0, %v1869_v0 }
0x18a9   :  { %1762 = vmatprep.subr.bf16.mxu0 %v1869_v0 }
0x18ac   :  { %1763 = vmatpush3.bf16.msra.mxu0 %v2193_v8 }
0x18ad   :  { %1776 = vmatprep.subr.bf16.mxu0 %v1869_v0 }
0x1902   :  { %v2277_v60 = vpop.f32.mrf.mxu0 }
0x1904   :  { %v2279_v61 = vpop.f32.mrf.mxu0 }
0x1905   :  { %v898_v52 = vadd.f32 %v2218_v48, %v2279_v61 }
0x1906   :  { %v2281_v62 = vpop.f32.mrf.mxu0 }
0x1908   :  { %v2283_v1 = vpop.f32.mrf.mxu0 }
0x1967   :  { %v1088_v3 = vpop.f32.mrf.mxu0 }
0x1968   :  { %v1094_v4 = vadd.f32 %v1088_v3, %v890_v2 }
0x1969   :  { %v1750_v5 = vpop.f32.mrf.mxu0 }
0x196a   :  { %v1095_v13 = vmul.f32 0.5, %v1094_v4 }
0x196b   :  { %v1091_v6 = vpop.f32.mrf.mxu0 }
0x196c   :  { %v1096_v7 = vsel %vm1987_vm4, %v1094_v4, %v1095_v13 }
0x196d   :  { %1845 = vtanh.f32 %v1096_v7  ;;  %v1751_v11 = vpop.f32.mrf.mxu0 }
0x197a   :  { %v1846_v12 = vpop.eup %1845 }
0x197b   :  { %v1098_v21 = vadd.f32 1.0, %v1846_v12 }
0x197d   :  { %v1099_v42 = vmul.f32 0.5, %v1098_v21 }
0x197f   :  { %v1100_v40 = vsel %vm1987_vm4, %v1846_v12, %v1099_v42  ;;  %v901_v42 = vadd.f32 %v2218_v48, %v2283_v1 }
0x1980   :  { %1103 = vrot.lane.b32.xlu1 %v1100_v40, %s1872_s3  ;;  %v1101_v23 = vmul.f32 %v1100_v40, %v1040_v18 }
0x19f2   :  { %v1104_v22 = vpop.permute.xlu1 %1103 }
0x19f3   :  { %v1106_v44 = vmul.f32 %v1104_v22, %v1100_v40 }
0x19f5   :  { %1108 = vrot.lane.b32.xlu0 %v1106_v44, %s1873_s29 }
0x1a67   :  { %v1109_v24 = vpop.permute.xlu0 %1108 }
0x1a68   :  { %v1111_v26 = vadd.f32 %v1109_v24, %v1101_v23 }
0x1a6a   :  { %1847 = vtanh.f32 %v1111_v26 }
0x1a77   :  { %v1848_v14 = vpop.eup %1847 }
0x1a78   :  { %1114 = vrot.lane.b32.xlu1 %v1848_v14, %s1872_s3 }
0x1aea   :  { %v1115_v28 = vpop.permute.xlu1 %1114 }
0x1aeb   :  { %v1117_v9 = vmul.f32 %v1115_v28, %v1100_v40 }
0x1aed   :  { %v1118_v29 = vpack.c.bf16 %v1117_v9, %v1117_v9 }
0x1aef   :  { %1120 = vrot.lane.b32.xlu0 %v1118_v29, %s1873_s29 }
0x1b61   :  { %v1121_v30 = vpop.permute.xlu0 %1120 }
0x1b62   :  { %1757 = vmatmul.mubr.msk.bf16.vlgmr.msra.gmra.mxu1 %vm168_vm5, %v1121_v30 }
0x1b63   :  { %1769 = vmatpush3.bf16.msra.mxu1 %v2182_v37  ;;  %1772 = vmatprep.mubr.msk.bf16.mxu1 %vm1870_vm0, %v1869_v0 }
0x1b64   :  { %1770 = vmatprep.subr.bf16.mxu1 %v1869_v0 }
0x1b67   :  { %1771 = vmatpush3.bf16.msra.mxu1 %v2193_v8 }
0x1b68   :  { %1784 = vmatprep.subr.bf16.mxu1 %v1869_v0 }
0x1c22   :  { %v1159_v33 = vpop.f32.mrf.mxu1 }
0x1c23   :  { %v1165_v63 = vadd.f32 %v1159_v33, %v893_v31 }
0x1c24   :  { %v1758_v34 = vpop.f32.mrf.mxu1 }
0x1c25   :  { %v1166_v19 = vmul.f32 0.5, %v1165_v63 }
0x1c26   :  { %v1162_v35 = vpop.f32.mrf.mxu1 }
0x1c27   :  { %v1167_v32 = vsel %vm1987_vm4, %v1165_v63, %v1166_v19 }
0x1c28   :  { %1849 = vtanh.f32 %v1167_v32  ;;  %v1759_v27 = vpop.f32.mrf.mxu1 }
0x1c29   :  { %v906_v27 = vadd.f32 %v2277_v60, %v2218_v48 }
0x1c35   :  { %v1850_v36 = vpop.eup %1849 }
0x1c36   :  { %v1169_v38 = vadd.f32 1.0, %v1850_v36 }
0x1c38   :  { %v1170_v39 = vmul.f32 0.5, %v1169_v38 }
0x1c3a   :  { %v1171_v41 = vsel %vm1987_vm4, %v1850_v36, %v1170_v39 }
0x1c3b   :  { %1174 = vrot.lane.b32.xlu1 %v1171_v41, %s1872_s3  ;;  %v1172_v46 = vmul.f32 %v1171_v41, %v1111_v26 }
0x1cad   :  { %v1175_v43 = vpop.permute.xlu1 %1174 }
0x1cae   :  { %v1177_v10 = vmul.f32 %v1175_v43, %v1171_v41 }
0x1cb0   :  { %1179 = vrot.lane.b32.xlu0 %v1177_v10, %s1873_s29 }
0x1d22   :  { %v1180_v15 = vpop.permute.xlu0 %1179 }
0x1d23   :  { %v1182_v47 = vadd.f32 %v1180_v15, %v1172_v46 }
0x1d25   :  { %1851 = vtanh.f32 %v1182_v47 }
0x1d32   :  { %v1852_v16 = vpop.eup %1851 }
0x1d33   :  { %1185 = vrot.lane.b32.xlu1 %v1852_v16, %s1872_s3 }
0x1da5   :  { %v1186_v18 = vpop.permute.xlu1 %1185 }
0x1da6   :  { %v1188_v49 = vmul.f32 %v1186_v18, %v1171_v41 }
0x1da8   :  { %v1189_v50 = vpack.c.bf16 %v1188_v49, %v1188_v49 }
0x1daa   :  { %1191 = vrot.lane.b32.xlu0 %v1189_v50, %s1873_s29 }
0x1e1c   :  { %v1192_v51 = vpop.permute.xlu0 %1191 }
0x1e1d   :  { %1765 = vmatmul.mubr.msk.bf16.vlgmr.msra.gmra.mxu0 %vm168_vm5, %v1192_v51 }
0x1e1e   :  { %1777 = vmatpush3.bf16.msra.mxu0 %v2182_v37  ;;  %1780 = vmatprep.mubr.msk.bf16.mxu0 %vm1870_vm0, %v1869_v0 }
0x1e1f   :  { %1778 = vmatprep.subr.bf16.mxu0 %v1869_v0 }
0x1e22   :  { %1779 = vmatpush3.bf16.msra.mxu0 %v2193_v8 }
0x1e23   :  { %1792 = vmatprep.subr.bf16.mxu0 %v1869_v0 }
0x1edd   :  { %v1230_v54 = vpop.f32.mrf.mxu0 }
0x1ede   :  { %v1236_v55 = vadd.f32 %v1230_v54, %v898_v52 }
0x1edf   :  { %v1766_v20 = vpop.f32.mrf.mxu0 }
0x1ee0   :  { %v1237_v17 = vmul.f32 0.5, %v1236_v55 }
0x1ee1   :  { %v1233_v56 = vpop.f32.mrf.mxu0 }
0x1ee2   :  { %v1238_v57 = vsel %vm1987_vm4, %v1236_v55, %v1237_v17 }
0x1ee3   :  { %1853 = vtanh.f32 %v1238_v57  ;;  %v1767_v53 = vpop.f32.mrf.mxu0  ;;  %v909_v57 = vadd.f32 %v2281_v62, %v2218_v48 }
0x1ef0   :  { %v1854_v45 = vpop.eup %1853 }
0x1ef1   :  { %v1240_v58 = vadd.f32 1.0, %v1854_v45 }
0x1ef3   :  { %v1241_v59 = vmul.f32 0.5, %v1240_v58 }
0x1ef5   :  { %v1242_v2 = vsel %vm1987_vm4, %v1854_v45, %v1241_v59 }
0x1ef6   :  { %1245 = vrot.lane.b32.xlu1 %v1242_v2, %s1872_s3  ;;  %v1243_v4 = vmul.f32 %v1242_v2, %v1182_v47 }
0x1f68   :  { %v1246_v3 = vpop.permute.xlu1 %1245 }
0x1f69   :  { %v1248_v61 = vmul.f32 %v1246_v3, %v1242_v2 }
0x1f6b   :  { %1250 = vrot.lane.b32.xlu0 %v1248_v61, %s1873_s29 }
0x1fdd   :  { %v1251_v5 = vpop.permute.xlu0 %1250 }
0x1fde   :  { %v1253_v13 = vadd.f32 %v1251_v5, %v1243_v4 }
0x1fe0   :  { %1855 = vtanh.f32 %v1253_v13 }
0x1fed   :  { %v1856_v6 = vpop.eup %1855 }
0x1fee   :  { %1256 = vrot.lane.b32.xlu1 %v1856_v6, %s1872_s3 }
0x2060   :  { %v1257_v7 = vpop.permute.xlu1 %1256 }
0x2061   :  { %v1259_v11 = vmul.f32 %v1257_v7, %v1242_v2 }
0x2063   :  { %v1260_v12 = vpack.c.bf16 %v1259_v11, %v1259_v11 }
0x2065   :  { %1262 = vrot.lane.b32.xlu0 %v1260_v12, %s1873_s29 }
0x20d7   :  { %v1263_v21 = vpop.permute.xlu0 %1262 }
0x20d8   :  { %1773 = vmatmul.mubr.msk.bf16.vlgmr.msra.gmra.mxu1 %vm168_vm5, %v1263_v21  ;;  %v1476_v21 = vld [vmem:[%s2396_s7 + $0x10] sm:$0xff] }
0x20d9   :  { %1785 = vmatpush3.bf16.msra.mxu1 %v2182_v37  ;;  %1788 = vmatprep.mubr.msk.bf16.mxu1 %vm1870_vm0, %v1869_v0 }
0x20da   :  { %1786 = vmatprep.subr.bf16.mxu1 %v1869_v0 }
0x20dd   :  { %1787 = vmatpush3.bf16.msra.mxu1 %v2193_v8 }
0x2198   :  { %v1301_v40 = vpop.f32.mrf.mxu1 }
0x2199   :  { %v1307_v22 = vadd.f32 %v1301_v40, %v901_v42  ;;  %v1477_v42 = vld [vmem:[%s2396_s7 + $0x18] sm:$0xff] }
0x219a   :  { %v1774_v44 = vpop.f32.mrf.mxu1  ;;  %v1479_v40 = vpack.c.bf16 %v1477_v42, %v1476_v21 }
0x219b   :  { %v1308_v23 = vmul.f32 0.5, %v1307_v22 }
0x219c   :  { %v1304_v24 = vpop.f32.mrf.mxu1 }
0x219d   :  { %v1309_v26 = vsel %vm1987_vm4, %v1307_v22, %v1308_v23  ;;  %v1475_v22 = vld [vmem:[%s2396_s7 + $0x8] sm:$0xff] }
0x219e   :  { %1857 = vtanh.f32 %v1309_v26  ;;  %v1775_v37 = vpop.f32.mrf.mxu1  ;;  %v1478_v44 = vpack.c.bf16 %v1475_v22, %v1474_v25 }
0x21ab   :  { %v1858_v14 = vpop.eup %1857 }
0x21ac   :  { %v1311_v28 = vadd.f32 1.0, %v1858_v14 }
0x21ae   :  { %v1312_v9 = vmul.f32 0.5, %v1311_v28  ;;  %v1570_v28 = vld [vmem:[%s2397_s8] ss:$0 sm:$0xff] }
0x21b0   :  { %v1313_v29 = vsel %vm1987_vm4, %v1858_v14, %v1312_v9 }
0x21b1   :  { %1316 = vrot.lane.b32.xlu1 %v1313_v29, %s1872_s3  ;;  %v1314_v30 = vmul.f32 %v1313_v29, %v1253_v13 }
0x2223   :  { %v1317_v8 = vpop.permute.xlu1 %1316 }
0x2224   :  { %v1319_v1 = vmul.f32 %v1317_v8, %v1313_v29 }
0x2226   :  { %1321 = vrot.lane.b32.xlu0 %v1319_v1, %s1873_s29 }
0x2298   :  { %v1322_v31 = vpop.permute.xlu0 %1321 }
0x2299   :  { %v1324_v33 = vadd.f32 %v1322_v31, %v1314_v30 }
0x229b   :  { %1859 = vtanh.f32 %v1324_v33 }
0x22a8   :  { %v1860_v63 = vpop.eup %1859 }
0x22a9   :  { %1327 = vrot.lane.b32.xlu1 %v1860_v63, %s1872_s3 }
0x231b   :  { %v1328_v34 = vpop.permute.xlu1 %1327 }
0x231c   :  { %v1330_v19 = vmul.f32 %v1328_v34, %v1313_v29 }
0x231e   :  { %v1331_v35 = vpack.c.bf16 %v1330_v19, %v1330_v19 }
0x2320   :  { %1333 = vrot.lane.b32.xlu0 %v1331_v35, %s1873_s29 }
0x2392   :  { %v1334_v32 = vpop.permute.xlu0 %1333 }
0x2393   :  { %1781 = vmatmul.mubr.msk.bf16.vlgmr.msra.gmra.mxu0 %vm168_vm5, %v1334_v32 }
0x2394   :  { %1796 = vmatprep.mubr.msk.bf16.mxu0 %vm1870_vm0, %v1869_v0  ;;  %1793 = vmatpush3.bf16.msra.mxu0 %v1479_v40 }
0x2395   :  { %1794 = vmatprep.subr.bf16.mxu0 %v1869_v0 }
0x2398   :  { %1795 = vmatpush3.bf16.msra.mxu0 %v1478_v44 }
0x2453   :  { %v1372_v36 = vpop.f32.mrf.mxu0 }
0x2454   :  { %v1378_v38 = vadd.f32 %v1372_v36, %v906_v27 }
0x2455   :  { %v1782_v39 = vpop.f32.mrf.mxu0 }
0x2456   :  { %v1379_v41 = vmul.f32 0.5, %v1378_v38 }
0x2457   :  { %v1375_v43 = vpop.f32.mrf.mxu0 }
0x2458   :  { %v1380_v10 = vsel %vm1987_vm4, %v1378_v38, %v1379_v41 }
0x2459   :  { %1861 = vtanh.f32 %v1380_v10  ;;  %v1783_v46 = vpop.f32.mrf.mxu0 }
0x2466   :  { %v1862_v15 = vpop.eup %1861 }
0x2467   :  { %v1382_v47 = vadd.f32 1.0, %v1862_v15 }
0x2469   :  { %v1383_v16 = vmul.f32 0.5, %v1382_v47 }
0x246b   :  { %v1384_v18 = vsel %vm1987_vm4, %v1862_v15, %v1383_v16 }
0x246c   :  { %1387 = vrot.lane.b32.xlu1 %v1384_v18, %s1872_s3  ;;  %v1385_v50 = vmul.f32 %v1384_v18, %v1324_v33 }
0x24de   :  { %v1388_v49 = vpop.permute.xlu1 %1387 }
0x24df   :  { %v1390_v60 = vmul.f32 %v1388_v49, %v1384_v18 }
0x24e1   :  { %1392 = vrot.lane.b32.xlu0 %v1390_v60, %s1873_s29 }
0x2553   :  { %v1393_v51 = vpop.permute.xlu0 %1392 }
0x2554   :  { %v1395_v52 = vadd.f32 %v1393_v51, %v1385_v50 }
0x2556   :  { %1863 = vtanh.f32 %v1395_v52 }
0x2563   :  { %v1864_v54 = vpop.eup %1863 }
0x2564   :  { %1398 = vrot.lane.b32.xlu1 %v1864_v54, %s1872_s3 }
0x25d6   :  { %v1399_v55 = vpop.permute.xlu1 %1398 }
0x25d7   :  { %v1401_v20 = vmul.f32 %v1399_v55, %v1384_v18 }
0x25d9   :  { %v1402_v17 = vpack.c.bf16 %v1401_v20, %v1401_v20 }
0x25db   :  { %1404 = vrot.lane.b32.xlu0 %v1402_v17, %s1873_s29 }
0x264d   :  { %v1405_v56 = vpop.permute.xlu0 %1404 }
0x264e   :  { %1789 = vmatmul.mubr.msk.bf16.vlgmr.msra.gmra.mxu1 %vm168_vm5, %v1405_v56 }
0x270e   :  { %v1443_v53 = vpop.f32.mrf.mxu1 }
0x270f   :  { %v1449_v45 = vadd.f32 %v1443_v53, %v909_v57 }
0x2710   :  { %v1790_v58 = vpop.f32.mrf.mxu1 }
0x2711   :  { %v1450_v59 = vmul.f32 0.5, %v1449_v45 }
0x2712   :  { %v1446_v2 = vpop.f32.mrf.mxu1 }
0x2713   :  { %v1451_v3 = vsel %vm1987_vm4, %v1449_v45, %v1450_v59 }
0x2714   :  { %1865 = vtanh.f32 %v1451_v3  ;;  %v1791_v61 = vpop.f32.mrf.mxu1 }
0x2721   :  { %v1866_v4 = vpop.eup %1865 }
0x2722   :  { %v1453_v5 = vadd.f32 1.0, %v1866_v4 }
0x2724   :  { %v1454_v13 = vmul.f32 0.5, %v1453_v5 }
0x2726   :  { %v1455_v6 = vsel %vm1987_vm4, %v1866_v4, %v1454_v13 }
0x2727   :  { %1458 = vrot.lane.b32.xlu1 %v1455_v6, %s1872_s3  ;;  %v1456_v62 = vmul.f32 %v1455_v6, %v1395_v52 }
0x2799   :  { %v1459_v7 = vpop.permute.xlu1 %1458 }
0x279a   :  { %v1461_v48 = vmul.f32 %v1459_v7, %v1455_v6 }
0x279c   :  { %1463 = vrot.lane.b32.xlu0 %v1461_v48, %s1873_s29 }
0x280e   :  { %v1464_v11 = vpop.permute.xlu0 %1463 }
0x280f   :  { %v1466_v12 = vadd.f32 %v1464_v11, %v1456_v62 }
0x2811   :  { %1867 = vtanh.f32 %v1466_v12 }
0x281e   :  { %v1868_v23 = vpop.eup %1867 }
0x281f   :  { %1469 = vrot.lane.b32.xlu1 %v1868_v23, %s1872_s3 }
0x2891   :  { %v1470_v24 = vpop.permute.xlu1 %1469 }
0x2892   :  { %v1472_v26 = vmul.f32 %v1470_v24, %v1455_v6 }
0x2894   :  { %v1473_v37 = vpack.c.bf16 %v1472_v26, %v1472_v26 }
0x2896   :  { %1488 = vrot.lane.b32.xlu0 %v1473_v37, %s1873_s29 }
0x2908   :  { %v1489_v14 = vpop.permute.xlu0 %1488 }
0x2909   :  { %1797 = vmatmul.mubr.msk.bf16.vlgmr.msra.gmra.mxu0 %vm168_vm5, %v1489_v14 }
0x29c9   :  { %v1527_v9 = vpop.f32.mrf.mxu0 }
0x29ca   :  { %v1528_v29 = vadd.f32 %v1570_v28, %v1527_v9 }
0x29cb   :  { %v1798_v8 = vpop.f32.mrf.mxu0 }
0x29cc   :  { %1533 = vst [vmem:[%s2398_s9] sm:$0xff] %v1528_v29 }
0x29cd   :  { %v1530_v0 = vpop.f32.mrf.mxu0 }
0x29cf   :  { %v1799_v1 = vpop.f32.mrf.mxu0 }

</bundles_post_ra>
